<compile_context>
chip_gen: v7x
topology: tpu7x:2x2x1
jax: 0.10.0
libtpu: 0.0.40
codegen_flags: <defaults>
</compile_context>

<pallas_src>
import functools

import jax
import jax.numpy as jnp
import numpy as np
from jax import lax
from jax.experimental import pallas as pl
from jax.experimental.pallas import tpu as pltpu


# ---------------------------------------------------------------------------
# Fused kernel: QKV head projections + softmax attention + concat + proj +
# residual + LayerNormalization, one batch *block* per grid step.
# ---------------------------------------------------------------------------
def _mha_fused_kernel(q_ref, k_ref, v_ref, wq_ref, wk_ref, wv_ref,
                      wp_ref, bp_ref, g_ref, beta_ref,
                      out_ref, attn_ref, *,
                      bb, len_q, len_k, n_heads, d_k, d_v, eps):
    # q_ref/k_ref/v_ref : (bb*len, d_model)  (flattened batch block)
    # wq_ref/wk_ref     : (d_model, n_heads*d_k)   (heads stacked along columns)
    # wv_ref            : (d_model, n_heads*d_v)
    # wp_ref            : (d_model, n_heads*d_v)   (original nn.Linear layout)
    # bp_ref/g_ref/beta_ref : (1, d_model)
    # out_ref           : (bb*len_q, d_model)
    # attn_ref          : (n_heads, bb, len_q, len_k)
    d_model = q_ref.shape[-1]
    q = q_ref[...]
    k = k_ref[...]
    v = v_ref[...]

    # Fused head projections: three full-width MXU matmuls over the whole block.
    qh_all = jnp.dot(q, wq_ref[...], preferred_element_type=jnp.float32)  # (bb*Lq, H*dk)
    kh_all = jnp.dot(k, wk_ref[...], preferred_element_type=jnp.float32)  # (bb*Lk, H*dk)
    vh_all = jnp.dot(v, wv_ref[...], preferred_element_type=jnp.float32)  # (bb*Lk, H*dv)

    inv_temper = jnp.float32(1.0 / (float(d_k) ** 0.5))

    o_rows = []
    for b in range(bb):            # static unroll; everything stays in VMEM/vregs
        q_rows = slice(b * len_q, (b + 1) * len_q)
        kv_rows = slice(b * len_k, (b + 1) * len_k)
        head_outs = []
        for h in range(n_heads):
            qh = qh_all[q_rows, h * d_k:(h + 1) * d_k]
            kh = kh_all[kv_rows, h * d_k:(h + 1) * d_k]
            vh = vh_all[kv_rows, h * d_v:(h + 1) * d_v]

            # qh @ kh.T without materializing the transpose.
            scores = lax.dot_general(
                qh, kh, (((1,), (1,)), ((), ())),
                preferred_element_type=jnp.float32) * inv_temper

            m = jnp.max(scores, axis=-1, keepdims=True)
            e = jnp.exp(scores - m)
            p = e * pl.reciprocal(jnp.sum(e, axis=-1, keepdims=True), approx=True)

            attn_ref[h, b] = p     # already in final (heads, batch, Lq, Lk) layout
            head_outs.append(jnp.dot(p, vh, preferred_element_type=jnp.float32))
        o_rows.append(jnp.concatenate(head_outs, axis=-1))      # (Lq, H*dv)

    # Concatenated head outputs for the whole batch block stay in VMEM.
    o_cat = jnp.concatenate(o_rows, axis=0) if bb > 1 else o_rows[0]  # (bb*Lq, H*dv)

    # o_cat @ W_proj.T + b : contract against the original (d_model, H*d_v)
    # weight layout so no transpose is needed anywhere.
    proj = lax.dot_general(
        o_cat, wp_ref[...], (((1,), (1,)), ((), ())),
        preferred_element_type=jnp.float32) + bp_ref[...]

    z = proj + q   # residual add (residual == original q)

    # LayerNormalization: mean / unbiased std over d_model, eps added to sigma.
    mu = jnp.mean(z, axis=-1, keepdims=True)
    var = jnp.sum((z - mu) ** 2, axis=-1, keepdims=True) * jnp.float32(
        1.0 / (d_model - 1))
    sigma = jnp.sqrt(var)
    ln = (z - mu) * pl.reciprocal(sigma + jnp.float32(eps), approx=True)

    out_ref[...] = ln * g_ref[...] + beta_ref[...]


# ---------------------------------------------------------------------------
# Wrapper
# ---------------------------------------------------------------------------
def multi_head_attention(q, k, v, params, *, n_heads, d_k, d_v, eps=1e-3,
                         batch_block=None):
    batch, len_q, d_model = q.shape
    _, len_k, _ = k.shape
    _, len_v, _ = v.shape
    assert len_k == len_v

    bb = batch if batch_block is None else batch_block
    assert batch % bb == 0

    # Stack per-head weights along the output dim so each projection is a
    # single full-width matmul.  (In a real model do this once at param setup.)
    wq_s = jnp.transpose(params["w_q"], (1, 0, 2)).reshape(d_model, n_heads * d_k)
    wk_s = jnp.transpose(params["w_k"], (1, 0, 2)).reshape(d_model, n_heads * d_k)
    wv_s = jnp.transpose(params["w_v"], (1, 0, 2)).reshape(d_model, n_heads * d_v)
    w_proj = params["w_proj"]                              # (d_model, n_heads*d_v)
    b_proj2 = params["b_proj"].reshape(1, d_model)
    gain2 = params["ln_gain"].reshape(1, d_model)
    bias2 = params["ln_bias"].reshape(1, d_model)

    # Metadata-only flattening: projections / proj / LN run over whole
    # (bb*len, d_model) slabs and the main output is a contiguous slab too.
    q2 = q.reshape(batch * len_q, d_model)
    k2 = k.reshape(batch * len_k, d_model)
    v2 = v.reshape(batch * len_v, d_model)

    kernel = functools.partial(_mha_fused_kernel, bb=bb, len_q=len_q,
                               len_k=len_k, n_heads=n_heads, d_k=d_k,
                               d_v=d_v, eps=eps)

    fn = pl.pallas_call(
        kernel,
        out_shape=(
            jax.ShapeDtypeStruct((batch * len_q, d_model), jnp.float32),
            jax.ShapeDtypeStruct((n_heads, batch, len_q, len_k), jnp.float32),
        ),
        grid_spec=pltpu.PrefetchScalarGridSpec(
            num_scalar_prefetch=0,
            grid=(batch // bb,),
            in_specs=[
                pl.BlockSpec((bb * len_q, d_model), lambda i: (i, 0)),         # q (flat)
                pl.BlockSpec((bb * len_k, d_model), lambda i: (i, 0)),         # k (flat)
                pl.BlockSpec((bb * len_v, d_model), lambda i: (i, 0)),         # v (flat)
                pl.BlockSpec((d_model, n_heads * d_k), lambda i: (0, 0)),      # W_q stacked
                pl.BlockSpec((d_model, n_heads * d_k), lambda i: (0, 0)),      # W_k stacked
                pl.BlockSpec((d_model, n_heads * d_v), lambda i: (0, 0)),      # W_v stacked
                pl.BlockSpec((d_model, n_heads * d_v), lambda i: (0, 0)),      # W_proj
                pl.BlockSpec((1, d_model), lambda i: (0, 0)),                  # b_proj
                pl.BlockSpec((1, d_model), lambda i: (0, 0)),                  # ln gain
                pl.BlockSpec((1, d_model), lambda i: (0, 0)),                  # ln bias
            ],
            out_specs=[
                pl.BlockSpec((bb * len_q, d_model), lambda i: (i, 0)),
                pl.BlockSpec((n_heads, bb, len_q, len_k), lambda i: (0, i, 0, 0)),
            ],
        ),
        compiler_params=pltpu.CompilerParams(
            dimension_semantics=("parallel",)),
    )
    out_flat, attns = fn(q2, k2, v2, wq_s, wk_s, wv_s, w_proj,
                         b_proj2, gain2, bias2)
    return out_flat.reshape(batch, len_q, d_model), attns


# ---------------------------------------------------------------------------
# Pure-JAX reference (same math) for a sanity check
# ---------------------------------------------------------------------------
def _reference(q, k, v, params, *, n_heads, d_k, d_v, eps=1e-3):
    batch, len_q, d_model = q.shape
    qh = jnp.einsum("bld,hde->hble", q, params["w_q"])
    kh = jnp.einsum("bld,hde->hble", k, params["w_k"])
    vh = jnp.einsum("bld,hde->hble", v, params["w_v"])
    scores = jnp.einsum("hbqe,hbke->hbqk", qh, kh) / jnp.sqrt(jnp.float32(d_k))
    p = jax.nn.softmax(scores, axis=-1)
    o = jnp.einsum("hbqk,hbke->hbqe", p, vh)
    o_cat = jnp.transpose(o, (1, 2, 0, 3)).reshape(batch, len_q, n_heads * d_v)
    proj = o_cat @ params["w_proj"].T + params["b_proj"]
    z = proj + q
    mu = jnp.mean(z, axis=-1, keepdims=True)
    var = jnp.sum((z - mu) ** 2, axis=-1, keepdims=True) / (d_model - 1)
    ln = (z - mu) / (jnp.sqrt(var) + eps)
    return ln * params["ln_gain"] + params["ln_bias"], p


if __name__ == "__main__":
    # Small shapes consistent with the module.
    batch, seq, d_model = 2, 8, 32
    n_heads, d_k, d_v = 4, 8, 8
    assert n_heads * d_k == d_model

    key = jax.random.PRNGKey(0)
    kq, kk, kv, kwq, kwk, kwv, kwp, kbp = jax.random.split(key, 8)

    q = jax.random.normal(kq, (batch, seq, d_model), dtype=jnp.float32)
    k = jax.random.normal(kk, (batch, seq, d_model), dtype=jnp.float32)
    v = jax.random.normal(kv, (batch, seq, d_model), dtype=jnp.float32)

    # Deterministic parameter init (xavier-normal-ish for head weights).
    def xavier_normal(rng, shape):
        fan_in, fan_out = shape[-2], shape[-1]
        std = (2.0 / (fan_in + fan_out)) ** 0.5
        return std * jax.random.normal(rng, shape, dtype=jnp.float32)

    params = {
        "w_q": xavier_normal(kwq, (n_heads, d_model, d_k)),
        "w_k": xavier_normal(kwk, (n_heads, d_model, d_k)),
        "w_v": xavier_normal(kwv, (n_heads, d_model, d_v)),
        "w_proj": xavier_normal(kwp, (d_model, n_heads * d_v)),  # nn.Linear weight (out, in)
        "b_proj": 0.01 * jax.random.normal(kbp, (d_model,), dtype=jnp.float32),
        "ln_gain": jnp.ones((d_model,), dtype=jnp.float32),
        "ln_bias": jnp.zeros((d_model,), dtype=jnp.float32),
    }

    out, attns = multi_head_attention(q, k, v, params,
                                      n_heads=n_heads, d_k=d_k, d_v=d_v)
    out = jax.block_until_ready(out)
    attns = jax.block_until_ready(attns)

    ref_out, ref_attn = _reference(q, k, v, params,
                                   n_heads=n_heads, d_k=d_k, d_v=d_v)
    # Tolerances account for the approximate (EUP) reciprocals in softmax/LN.
    np.testing.assert_allclose(np.asarray(out), np.asarray(ref_out),
                               rtol=1e-2, atol=1e-2)
    np.testing.assert_allclose(np.asarray(attns), np.asarray(ref_attn),
                               rtol=1e-2, atol=1e-2)

    assert out.shape == (batch, seq, d_model)
    assert attns.shape == (n_heads, batch, seq, seq)
    print("KERNEL_OK")
</pallas_src>

<mosaic_0001>
module attributes {stable_mosaic.version = 11 : i64} {
  func.func @_mha_fused_kernel(%arg0: i32, %arg1: memref<16x32xf32, #tpu.memory_space<vmem>>, %arg2: memref<16x32xf32, #tpu.memory_space<vmem>>, %arg3: memref<16x32xf32, #tpu.memory_space<vmem>>, %arg4: memref<32x32xf32, #tpu.memory_space<vmem>>, %arg5: memref<32x32xf32, #tpu.memory_space<vmem>>, %arg6: memref<32x32xf32, #tpu.memory_space<vmem>>, %arg7: memref<32x32xf32, #tpu.memory_space<vmem>>, %arg8: memref<1x32xf32, #tpu.memory_space<vmem>>, %arg9: memref<1x32xf32, #tpu.memory_space<vmem>>, %arg10: memref<1x32xf32, #tpu.memory_space<vmem>>, %arg11: memref<16x32xf32, #tpu.memory_space<vmem>>, %arg12: memref<4x2x8x8xf32, #tpu.memory_space<vmem>>) attributes {dimension_semantics = [#tpu.dimension_semantics<parallel>], iteration_bounds = array<i64: 1>, scalar_prefetch = 0 : i64, scratch_operands = 0 : i64, tpu.core_type = #tpu.core_type<tc>, window_params = [{transform_indices = @transform_0, window_bounds = array<i64: 16, 32>}, {transform_indices = @transform_1, window_bounds = array<i64: 16, 32>}, {transform_indices = @transform_2, window_bounds = array<i64: 16, 32>}, {pipeline_mode = #tpu.pipeline_mode<synchronous>, transform_indices = @transform_3, window_bounds = array<i64: 32, 32>}, {pipeline_mode = #tpu.pipeline_mode<synchronous>, transform_indices = @transform_4, window_bounds = array<i64: 32, 32>}, {pipeline_mode = #tpu.pipeline_mode<synchronous>, transform_indices = @transform_5, window_bounds = array<i64: 32, 32>}, {pipeline_mode = #tpu.pipeline_mode<synchronous>, transform_indices = @transform_6, window_bounds = array<i64: 32, 32>}, {pipeline_mode = #tpu.pipeline_mode<synchronous>, transform_indices = @transform_7, window_bounds = array<i64: 1, 32>}, {pipeline_mode = #tpu.pipeline_mode<synchronous>, transform_indices = @transform_8, window_bounds = array<i64: 1, 32>}, {pipeline_mode = #tpu.pipeline_mode<synchronous>, transform_indices = @transform_9, window_bounds = array<i64: 1, 32>}, {transform_indices = @transform_10, window_bounds = array<i64: 16, 32>}, {transform_indices = @transform_11, window_bounds = array<i64: 4, 2, 8, 8>}]} {
    %c0 = arith.constant 0 : index
    %c0_0 = arith.constant 0 : index
    %0 = vector.load %arg1[%c0, %c0_0] : memref<16x32xf32, #tpu.memory_space<vmem>>, vector<16x32xf32>
    %c0_1 = arith.constant 0 : index
    %c0_2 = arith.constant 0 : index
    %1 = vector.load %arg2[%c0_1, %c0_2] : memref<16x32xf32, #tpu.memory_space<vmem>>, vector<16x32xf32>
    %c0_3 = arith.constant 0 : index
    %c0_4 = arith.constant 0 : index
    %2 = vector.load %arg3[%c0_3, %c0_4] : memref<16x32xf32, #tpu.memory_space<vmem>>, vector<16x32xf32>
    %c0_5 = arith.constant 0 : index
    %c0_6 = arith.constant 0 : index
    %3 = vector.load %arg4[%c0_5, %c0_6] : memref<32x32xf32, #tpu.memory_space<vmem>>, vector<32x32xf32>
    %cst = arith.constant dense<0.000000e+00> : vector<16x32xf32>
    %4 = tpu.matmul %0, %3, %cst {dimension_numbers = #tpu.dot_dimension_numbers<[1], [0], [0], [1], [0, 0, 1, 1], [], []>} : vector<16x32xf32>, vector<32x32xf32>, vector<16x32xf32> -> vector<16x32xf32>
    %c0_7 = arith.constant 0 : index
    %c0_8 = arith.constant 0 : index
    %5 = vector.load %arg5[%c0_7, %c0_8] : memref<32x32xf32, #tpu.memory_space<vmem>>, vector<32x32xf32>
    %cst_9 = arith.constant dense<0.000000e+00> : vector<16x32xf32>
    %6 = tpu.matmul %1, %5, %cst_9 {dimension_numbers = #tpu.dot_dimension_numbers<[1], [0], [0], [1], [0, 0, 1, 1], [], []>} : vector<16x32xf32>, vector<32x32xf32>, vector<16x32xf32> -> vector<16x32xf32>
    %c0_10 = arith.constant 0 : index
    %c0_11 = arith.constant 0 : index
    %7 = vector.load %arg6[%c0_10, %c0_11] : memref<32x32xf32, #tpu.memory_space<vmem>>, vector<32x32xf32>
    %cst_12 = arith.constant dense<0.000000e+00> : vector<16x32xf32>
    %8 = tpu.matmul %2, %7, %cst_12 {dimension_numbers = #tpu.dot_dimension_numbers<[1], [0], [0], [1], [0, 0, 1, 1], [], []>} : vector<16x32xf32>, vector<32x32xf32>, vector<16x32xf32> -> vector<16x32xf32>
    %9 = vector.extract_strided_slice %4 {offsets = [0, 0], sizes = [8, 8], strides = [1, 1]} : vector<16x32xf32> to vector<8x8xf32>
    %10 = vector.extract_strided_slice %6 {offsets = [0, 0], sizes = [8, 8], strides = [1, 1]} : vector<16x32xf32> to vector<8x8xf32>
    %11 = vector.extract_strided_slice %8 {offsets = [0, 0], sizes = [8, 8], strides = [1, 1]} : vector<16x32xf32> to vector<8x8xf32>
    %cst_13 = arith.constant dense<0.000000e+00> : vector<8x8xf32>
    %12 = tpu.matmul %9, %10, %cst_13 {dimension_numbers = #tpu.dot_dimension_numbers<[1], [1], [0], [0], [0, 0, 1, 0], [], []>} : vector<8x8xf32>, vector<8x8xf32>, vector<8x8xf32> -> vector<8x8xf32>
    %cst_14 = arith.constant 0.353553385 : f32
    %13 = vector.broadcast %cst_14 : f32 to vector<8x8xf32>
    %14 = arith.mulf %12, %13 : vector<8x8xf32>
    %cst_15 = arith.constant dense<0xFF800000> : vector<8xf32>
    %15 = vector.multi_reduction <maximumf>, %14, %cst_15 [1] : vector<8x8xf32> to vector<8xf32>
    %16 = vector.shape_cast %15 : vector<8xf32> to vector<8x1xf32>
    %17 = vector.broadcast %16 : vector<8x1xf32> to vector<8x8xf32>
    %18 = arith.subf %14, %17 : vector<8x8xf32>
    %19 = math.exp %18 : vector<8x8xf32>
    %cst_16 = arith.constant dense<0.000000e+00> : vector<8xf32>
    %20 = vector.multi_reduction <add>, %19, %cst_16 [1] : vector<8x8xf32> to vector<8xf32>
    %21 = vector.shape_cast %20 : vector<8xf32> to vector<8x1xf32>
    %22 = tpu.reciprocal %21 {approx = true} : vector<8x1xf32> -> vector<8x1xf32>
    %23 = vector.broadcast %22 : vector<8x1xf32> to vector<8x8xf32>
    %24 = arith.mulf %19, %23 : vector<8x8xf32>
    %c0_17 = arith.constant 0 : index
    %c0_18 = arith.constant 0 : index
    %c0_19 = arith.constant 0 : index
    %c0_20 = arith.constant 0 : index
    %25 = vector.load %arg12[%c0_17, %c0_18, %c0_19, %c0_20] : memref<4x2x8x8xf32, #tpu.memory_space<vmem>>, vector<1x1x8x8xf32>
    %26 = vector.shape_cast %25 : vector<1x1x8x8xf32> to vector<8x8xf32>
    %27 = vector.shape_cast %24 : vector<8x8xf32> to vector<1x1x8x8xf32>
    tpu.vector_store %arg12[%c0_17, %c0_18, %c0_19, %c0_20], %27 {strides = array<i32>} : memref<4x2x8x8xf32, #tpu.memory_space<vmem>>, vector<1x1x8x8xf32>,
    %cst_21 = arith.constant dense<0.000000e+00> : vector<8x8xf32>
    %28 = tpu.matmul %24, %11, %cst_21 {dimension_numbers = #tpu.dot_dimension_numbers<[1], [0], [0], [1], [0, 0, 1, 1], [], []>} : vector<8x8xf32>, vector<8x8xf32>, vector<8x8xf32> -> vector<8x8xf32>
    %29 = vector.extract_strided_slice %4 {offsets = [0, 8], sizes = [8, 8], strides = [1, 1]} : vector<16x32xf32> to vector<8x8xf32>
    %30 = vector.extract_strided_slice %6 {offsets = [0, 8], sizes = [8, 8], strides = [1, 1]} : vector<16x32xf32> to vector<8x8xf32>
    %31 = vector.extract_strided_slice %8 {offsets = [0, 8], sizes = [8, 8], strides = [1, 1]} : vector<16x32xf32> to vector<8x8xf32>
    %cst_22 = arith.constant dense<0.000000e+00> : vector<8x8xf32>
    %32 = tpu.matmul %29, %30, %cst_22 {dimension_numbers = #tpu.dot_dimension_numbers<[1], [1], [0], [0], [0, 0, 1, 0], [], []>} : vector<8x8xf32>, vector<8x8xf32>, vector<8x8xf32> -> vector<8x8xf32>
    %cst_23 = arith.constant 0.353553385 : f32
    %33 = vector.broadcast %cst_23 : f32 to vector<8x8xf32>
    %34 = arith.mulf %32, %33 : vector<8x8xf32>
    %cst_24 = arith.constant dense<0xFF800000> : vector<8xf32>
    %35 = vector.multi_reduction <maximumf>, %34, %cst_24 [1] : vector<8x8xf32> to vector<8xf32>
    %36 = vector.shape_cast %35 : vector<8xf32> to vector<8x1xf32>
    %37 = vector.broadcast %36 : vector<8x1xf32> to vector<8x8xf32>
    %38 = arith.subf %34, %37 : vector<8x8xf32>
    %39 = math.exp %38 : vector<8x8xf32>
    %cst_25 = arith.constant dense<0.000000e+00> : vector<8xf32>
    %40 = vector.multi_reduction <add>, %39, %cst_25 [1] : vector<8x8xf32> to vector<8xf32>
    %41 = vector.shape_cast %40 : vector<8xf32> to vector<8x1xf32>
    %42 = tpu.reciprocal %41 {approx = true} : vector<8x1xf32> -> vector<8x1xf32>
    %43 = vector.broadcast %42 : vector<8x1xf32> to vector<8x8xf32>
    %44 = arith.mulf %39, %43 : vector<8x8xf32>
    %c1 = arith.constant 1 : index
    %c0_26 = arith.constant 0 : index
    %c0_27 = arith.constant 0 : index
    %c0_28 = arith.constant 0 : index
    %45 = vector.load %arg12[%c1, %c0_26, %c0_27, %c0_28] : memref<4x2x8x8xf32, #tpu.memory_space<vmem>>, vector<1x1x8x8xf32>
    %46 = vector.shape_cast %45 : vector<1x1x8x8xf32> to vector<8x8xf32>
    %47 = vector.shape_cast %44 : vector<8x8xf32> to vector<1x1x8x8xf32>
    tpu.vector_store %arg12[%c1, %c0_26, %c0_27, %c0_28], %47 {strides = array<i32>} : memref<4x2x8x8xf32, #tpu.memory_space<vmem>>, vector<1x1x8x8xf32>,
    %cst_29 = arith.constant dense<0.000000e+00> : vector<8x8xf32>
    %48 = tpu.matmul %44, %31, %cst_29 {dimension_numbers = #tpu.dot_dimension_numbers<[1], [0], [0], [1], [0, 0, 1, 1], [], []>} : vector<8x8xf32>, vector<8x8xf32>, vector<8x8xf32> -> vector<8x8xf32>
    %49 = vector.extract_strided_slice %4 {offsets = [0, 16], sizes = [8, 8], strides = [1, 1]} : vector<16x32xf32> to vector<8x8xf32>
    %50 = vector.extract_strided_slice %6 {offsets = [0, 16], sizes = [8, 8], strides = [1, 1]} : vector<16x32xf32> to vector<8x8xf32>
    %51 = vector.extract_strided_slice %8 {offsets = [0, 16], sizes = [8, 8], strides = [1, 1]} : vector<16x32xf32> to vector<8x8xf32>
    %cst_30 = arith.constant dense<0.000000e+00> : vector<8x8xf32>
    %52 = tpu.matmul %49, %50, %cst_30 {dimension_numbers = #tpu.dot_dimension_numbers<[1], [1], [0], [0], [0, 0, 1, 0], [], []>} : vector<8x8xf32>, vector<8x8xf32>, vector<8x8xf32> -> vector<8x8xf32>
    %cst_31 = arith.constant 0.353553385 : f32
    %53 = vector.broadcast %cst_31 : f32 to vector<8x8xf32>
    %54 = arith.mulf %52, %53 : vector<8x8xf32>
    %cst_32 = arith.constant dense<0xFF800000> : vector<8xf32>
    %55 = vector.multi_reduction <maximumf>, %54, %cst_32 [1] : vector<8x8xf32> to vector<8xf32>
    %56 = vector.shape_cast %55 : vector<8xf32> to vector<8x1xf32>
    %57 = vector.broadcast %56 : vector<8x1xf32> to vector<8x8xf32>
    %58 = arith.subf %54, %57 : vector<8x8xf32>
    %59 = math.exp %58 : vector<8x8xf32>
    %cst_33 = arith.constant dense<0.000000e+00> : vector<8xf32>
    %60 = vector.multi_reduction <add>, %59, %cst_33 [1] : vector<8x8xf32> to vector<8xf32>
    %61 = vector.shape_cast %60 : vector<8xf32> to vector<8x1xf32>
    %62 = tpu.reciprocal %61 {approx = true} : vector<8x1xf32> -> vector<8x1xf32>
    %63 = vector.broadcast %62 : vector<8x1xf32> to vector<8x8xf32>
    %64 = arith.mulf %59, %63 : vector<8x8xf32>
    %c2 = arith.constant 2 : index
    %c0_34 = arith.constant 0 : index
    %c0_35 = arith.constant 0 : index
    %c0_36 = arith.constant 0 : index
    %65 = vector.load %arg12[%c2, %c0_34, %c0_35, %c0_36] : memref<4x2x8x8xf32, #tpu.memory_space<vmem>>, vector<1x1x8x8xf32>
    %66 = vector.shape_cast %65 : vector<1x1x8x8xf32> to vector<8x8xf32>
    %67 = vector.shape_cast %64 : vector<8x8xf32> to vector<1x1x8x8xf32>
    tpu.vector_store %arg12[%c2, %c0_34, %c0_35, %c0_36], %67 {strides = array<i32>} : memref<4x2x8x8xf32, #tpu.memory_space<vmem>>, vector<1x1x8x8xf32>,
    %cst_37 = arith.constant dense<0.000000e+00> : vector<8x8xf32>
    %68 = tpu.matmul %64, %51, %cst_37 {dimension_numbers = #tpu.dot_dimension_numbers<[1], [0], [0], [1], [0, 0, 1, 1], [], []>} : vector<8x8xf32>, vector<8x8xf32>, vector<8x8xf32> -> vector<8x8xf32>
    %69 = vector.extract_strided_slice %4 {offsets = [0, 24], sizes = [8, 8], strides = [1, 1]} : vector<16x32xf32> to vector<8x8xf32>
    %70 = vector.extract_strided_slice %6 {offsets = [0, 24], sizes = [8, 8], strides = [1, 1]} : vector<16x32xf32> to vector<8x8xf32>
    %71 = vector.extract_strided_slice %8 {offsets = [0, 24], sizes = [8, 8], strides = [1, 1]} : vector<16x32xf32> to vector<8x8xf32>
    %cst_38 = arith.constant dense<0.000000e+00> : vector<8x8xf32>
    %72 = tpu.matmul %69, %70, %cst_38 {dimension_numbers = #tpu.dot_dimension_numbers<[1], [1], [0], [0], [0, 0, 1, 0], [], []>} : vector<8x8xf32>, vector<8x8xf32>, vector<8x8xf32> -> vector<8x8xf32>
    %cst_39 = arith.constant 0.353553385 : f32
    %73 = vector.broadcast %cst_39 : f32 to vector<8x8xf32>
    %74 = arith.mulf %72, %73 : vector<8x8xf32>
    %cst_40 = arith.constant dense<0xFF800000> : vector<8xf32>
    %75 = vector.multi_reduction <maximumf>, %74, %cst_40 [1] : vector<8x8xf32> to vector<8xf32>
    %76 = vector.shape_cast %75 : vector<8xf32> to vector<8x1xf32>
    %77 = vector.broadcast %76 : vector<8x1xf32> to vector<8x8xf32>
    %78 = arith.subf %74, %77 : vector<8x8xf32>
    %79 = math.exp %78 : vector<8x8xf32>
    %cst_41 = arith.constant dense<0.000000e+00> : vector<8xf32>
    %80 = vector.multi_reduction <add>, %79, %cst_41 [1] : vector<8x8xf32> to vector<8xf32>
    %81 = vector.shape_cast %80 : vector<8xf32> to vector<8x1xf32>
    %82 = tpu.reciprocal %81 {approx = true} : vector<8x1xf32> -> vector<8x1xf32>
    %83 = vector.broadcast %82 : vector<8x1xf32> to vector<8x8xf32>
    %84 = arith.mulf %79, %83 : vector<8x8xf32>
    %c3 = arith.constant 3 : index
    %c0_42 = arith.constant 0 : index
    %c0_43 = arith.constant 0 : index
    %c0_44 = arith.constant 0 : index
    %85 = vector.load %arg12[%c3, %c0_42, %c0_43, %c0_44] : memref<4x2x8x8xf32, #tpu.memory_space<vmem>>, vector<1x1x8x8xf32>
    %86 = vector.shape_cast %85 : vector<1x1x8x8xf32> to vector<8x8xf32>
    %87 = vector.shape_cast %84 : vector<8x8xf32> to vector<1x1x8x8xf32>
    tpu.vector_store %arg12[%c3, %c0_42, %c0_43, %c0_44], %87 {strides = array<i32>} : memref<4x2x8x8xf32, #tpu.memory_space<vmem>>, vector<1x1x8x8xf32>,
    %cst_45 = arith.constant dense<0.000000e+00> : vector<8x8xf32>
    %88 = tpu.matmul %84, %71, %cst_45 {dimension_numbers = #tpu.dot_dimension_numbers<[1], [0], [0], [1], [0, 0, 1, 1], [], []>} : vector<8x8xf32>, vector<8x8xf32>, vector<8x8xf32> -> vector<8x8xf32>
    %89 = tpu.concatenate %28, %48, %68, %88 in 1 : vector<8x8xf32>, vector<8x8xf32>, vector<8x8xf32>, vector<8x8xf32> -> vector<8x32xf32>
    %90 = vector.extract_strided_slice %4 {offsets = [8, 0], sizes = [8, 8], strides = [1, 1]} : vector<16x32xf32> to vector<8x8xf32>
    %91 = vector.extract_strided_slice %6 {offsets = [8, 0], sizes = [8, 8], strides = [1, 1]} : vector<16x32xf32> to vector<8x8xf32>
    %92 = vector.extract_strided_slice %8 {offsets = [8, 0], sizes = [8, 8], strides = [1, 1]} : vector<16x32xf32> to vector<8x8xf32>
    %cst_46 = arith.constant dense<0.000000e+00> : vector<8x8xf32>
    %93 = tpu.matmul %90, %91, %cst_46 {dimension_numbers = #tpu.dot_dimension_numbers<[1], [1], [0], [0], [0, 0, 1, 0], [], []>} : vector<8x8xf32>, vector<8x8xf32>, vector<8x8xf32> -> vector<8x8xf32>
    %cst_47 = arith.constant 0.353553385 : f32
    %94 = vector.broadcast %cst_47 : f32 to vector<8x8xf32>
    %95 = arith.mulf %93, %94 : vector<8x8xf32>
    %cst_48 = arith.constant dense<0xFF800000> : vector<8xf32>
    %96 = vector.multi_reduction <maximumf>, %95, %cst_48 [1] : vector<8x8xf32> to vector<8xf32>
    %97 = vector.shape_cast %96 : vector<8xf32> to vector<8x1xf32>
    %98 = vector.broadcast %97 : vector<8x1xf32> to vector<8x8xf32>
    %99 = arith.subf %95, %98 : vector<8x8xf32>
    %100 = math.exp %99 : vector<8x8xf32>
    %cst_49 = arith.constant dense<0.000000e+00> : vector<8xf32>
    %101 = vector.multi_reduction <add>, %100, %cst_49 [1] : vector<8x8xf32> to vector<8xf32>
    %102 = vector.shape_cast %101 : vector<8xf32> to vector<8x1xf32>
    %103 = tpu.reciprocal %102 {approx = true} : vector<8x1xf32> -> vector<8x1xf32>
    %104 = vector.broadcast %103 : vector<8x1xf32> to vector<8x8xf32>
    %105 = arith.mulf %100, %104 : vector<8x8xf32>
    %c0_50 = arith.constant 0 : index
    %c1_51 = arith.constant 1 : index
    %c0_52 = arith.constant 0 : index
    %c0_53 = arith.constant 0 : index
    %106 = vector.load %arg12[%c0_50, %c1_51, %c0_52, %c0_53] : memref<4x2x8x8xf32, #tpu.memory_space<vmem>>, vector<1x1x8x8xf32>
    %107 = vector.shape_cast %106 : vector<1x1x8x8xf32> to vector<8x8xf32>
    %108 = vector.shape_cast %105 : vector<8x8xf32> to vector<1x1x8x8xf32>
    tpu.vector_store %arg12[%c0_50, %c1_51, %c0_52, %c0_53], %108 {strides = array<i32>} : memref<4x2x8x8xf32, #tpu.memory_space<vmem>>, vector<1x1x8x8xf32>,
    %cst_54 = arith.constant dense<0.000000e+00> : vector<8x8xf32>
    %109 = tpu.matmul %105, %92, %cst_54 {dimension_numbers = #tpu.dot_dimension_numbers<[1], [0], [0], [1], [0, 0, 1, 1], [], []>} : vector<8x8xf32>, vector<8x8xf32>, vector<8x8xf32> -> vector<8x8xf32>
    %110 = vector.extract_strided_slice %4 {offsets = [8, 8], sizes = [8, 8], strides = [1, 1]} : vector<16x32xf32> to vector<8x8xf32>
    %111 = vector.extract_strided_slice %6 {offsets = [8, 8], sizes = [8, 8], strides = [1, 1]} : vector<16x32xf32> to vector<8x8xf32>
    %112 = vector.extract_strided_slice %8 {offsets = [8, 8], sizes = [8, 8], strides = [1, 1]} : vector<16x32xf32> to vector<8x8xf32>
    %cst_55 = arith.constant dense<0.000000e+00> : vector<8x8xf32>
    %113 = tpu.matmul %110, %111, %cst_55 {dimension_numbers = #tpu.dot_dimension_numbers<[1], [1], [0], [0], [0, 0, 1, 0], [], []>} : vector<8x8xf32>, vector<8x8xf32>, vector<8x8xf32> -> vector<8x8xf32>
    %cst_56 = arith.constant 0.353553385 : f32
    %114 = vector.broadcast %cst_56 : f32 to vector<8x8xf32>
    %115 = arith.mulf %113, %114 : vector<8x8xf32>
    %cst_57 = arith.constant dense<0xFF800000> : vector<8xf32>
    %116 = vector.multi_reduction <maximumf>, %115, %cst_57 [1] : vector<8x8xf32> to vector<8xf32>
    %117 = vector.shape_cast %116 : vector<8xf32> to vector<8x1xf32>
    %118 = vector.broadcast %117 : vector<8x1xf32> to vector<8x8xf32>
    %119 = arith.subf %115, %118 : vector<8x8xf32>
    %120 = math.exp %119 : vector<8x8xf32>
    %cst_58 = arith.constant dense<0.000000e+00> : vector<8xf32>
    %121 = vector.multi_reduction <add>, %120, %cst_58 [1] : vector<8x8xf32> to vector<8xf32>
    %122 = vector.shape_cast %121 : vector<8xf32> to vector<8x1xf32>
    %123 = tpu.reciprocal %122 {approx = true} : vector<8x1xf32> -> vector<8x1xf32>
    %124 = vector.broadcast %123 : vector<8x1xf32> to vector<8x8xf32>
    %125 = arith.mulf %120, %124 : vector<8x8xf32>
    %c1_59 = arith.constant 1 : index
    %c1_60 = arith.constant 1 : index
    %c0_61 = arith.constant 0 : index
    %c0_62 = arith.constant 0 : index
    %126 = vector.load %arg12[%c1_59, %c1_60, %c0_61, %c0_62] : memref<4x2x8x8xf32, #tpu.memory_space<vmem>>, vector<1x1x8x8xf32>
    %127 = vector.shape_cast %126 : vector<1x1x8x8xf32> to vector<8x8xf32>
    %128 = vector.shape_cast %125 : vector<8x8xf32> to vector<1x1x8x8xf32>
    tpu.vector_store %arg12[%c1_59, %c1_60, %c0_61, %c0_62], %128 {strides = array<i32>} : memref<4x2x8x8xf32, #tpu.memory_space<vmem>>, vector<1x1x8x8xf32>,
    %cst_63 = arith.constant dense<0.000000e+00> : vector<8x8xf32>
    %129 = tpu.matmul %125, %112, %cst_63 {dimension_numbers = #tpu.dot_dimension_numbers<[1], [0], [0], [1], [0, 0, 1, 1], [], []>} : vector<8x8xf32>, vector<8x8xf32>, vector<8x8xf32> -> vector<8x8xf32>
    %130 = vector.extract_strided_slice %4 {offsets = [8, 16], sizes = [8, 8], strides = [1, 1]} : vector<16x32xf32> to vector<8x8xf32>
    %131 = vector.extract_strided_slice %6 {offsets = [8, 16], sizes = [8, 8], strides = [1, 1]} : vector<16x32xf32> to vector<8x8xf32>
    %132 = vector.extract_strided_slice %8 {offsets = [8, 16], sizes = [8, 8], strides = [1, 1]} : vector<16x32xf32> to vector<8x8xf32>
    %cst_64 = arith.constant dense<0.000000e+00> : vector<8x8xf32>
    %133 = tpu.matmul %130, %131, %cst_64 {dimension_numbers = #tpu.dot_dimension_numbers<[1], [1], [0], [0], [0, 0, 1, 0], [], []>} : vector<8x8xf32>, vector<8x8xf32>, vector<8x8xf32> -> vector<8x8xf32>
    %cst_65 = arith.constant 0.353553385 : f32
    %134 = vector.broadcast %cst_65 : f32 to vector<8x8xf32>
    %135 = arith.mulf %133, %134 : vector<8x8xf32>
    %cst_66 = arith.constant dense<0xFF800000> : vector<8xf32>
    %136 = vector.multi_reduction <maximumf>, %135, %cst_66 [1] : vector<8x8xf32> to vector<8xf32>
    %137 = vector.shape_cast %136 : vector<8xf32> to vector<8x1xf32>
    %138 = vector.broadcast %137 : vector<8x1xf32> to vector<8x8xf32>
    %139 = arith.subf %135, %138 : vector<8x8xf32>
    %140 = math.exp %139 : vector<8x8xf32>
    %cst_67 = arith.constant dense<0.000000e+00> : vector<8xf32>
    %141 = vector.multi_reduction <add>, %140, %cst_67 [1] : vector<8x8xf32> to vector<8xf32>
    %142 = vector.shape_cast %141 : vector<8xf32> to vector<8x1xf32>
    %143 = tpu.reciprocal %142 {approx = true} : vector<8x1xf32> -> vector<8x1xf32>
    %144 = vector.broadcast %143 : vector<8x1xf32> to vector<8x8xf32>
    %145 = arith.mulf %140, %144 : vector<8x8xf32>
    %c2_68 = arith.constant 2 : index
    %c1_69 = arith.constant 1 : index
    %c0_70 = arith.constant 0 : index
    %c0_71 = arith.constant 0 : index
    %146 = vector.load %arg12[%c2_68, %c1_69, %c0_70, %c0_71] : memref<4x2x8x8xf32, #tpu.memory_space<vmem>>, vector<1x1x8x8xf32>
    %147 = vector.shape_cast %146 : vector<1x1x8x8xf32> to vector<8x8xf32>
    %148 = vector.shape_cast %145 : vector<8x8xf32> to vector<1x1x8x8xf32>
    tpu.vector_store %arg12[%c2_68, %c1_69, %c0_70, %c0_71], %148 {strides = array<i32>} : memref<4x2x8x8xf32, #tpu.memory_space<vmem>>, vector<1x1x8x8xf32>,
    %cst_72 = arith.constant dense<0.000000e+00> : vector<8x8xf32>
    %149 = tpu.matmul %145, %132, %cst_72 {dimension_numbers = #tpu.dot_dimension_numbers<[1], [0], [0], [1], [0, 0, 1, 1], [], []>} : vector<8x8xf32>, vector<8x8xf32>, vector<8x8xf32> -> vector<8x8xf32>
    %150 = vector.extract_strided_slice %4 {offsets = [8, 24], sizes = [8, 8], strides = [1, 1]} : vector<16x32xf32> to vector<8x8xf32>
    %151 = vector.extract_strided_slice %6 {offsets = [8, 24], sizes = [8, 8], strides = [1, 1]} : vector<16x32xf32> to vector<8x8xf32>
    %152 = vector.extract_strided_slice %8 {offsets = [8, 24], sizes = [8, 8], strides = [1, 1]} : vector<16x32xf32> to vector<8x8xf32>
    %cst_73 = arith.constant dense<0.000000e+00> : vector<8x8xf32>
    %153 = tpu.matmul %150, %151, %cst_73 {dimension_numbers = #tpu.dot_dimension_numbers<[1], [1], [0], [0], [0, 0, 1, 0], [], []>} : vector<8x8xf32>, vector<8x8xf32>, vector<8x8xf32> -> vector<8x8xf32>
    %cst_74 = arith.constant 0.353553385 : f32
    %154 = vector.broadcast %cst_74 : f32 to vector<8x8xf32>
    %155 = arith.mulf %153, %154 : vector<8x8xf32>
    %cst_75 = arith.constant dense<0xFF800000> : vector<8xf32>
    %156 = vector.multi_reduction <maximumf>, %155, %cst_75 [1] : vector<8x8xf32> to vector<8xf32>
    %157 = vector.shape_cast %156 : vector<8xf32> to vector<8x1xf32>
    %158 = vector.broadcast %157 : vector<8x1xf32> to vector<8x8xf32>
    %159 = arith.subf %155, %158 : vector<8x8xf32>
    %160 = math.exp %159 : vector<8x8xf32>
    %cst_76 = arith.constant dense<0.000000e+00> : vector<8xf32>
    %161 = vector.multi_reduction <add>, %160, %cst_76 [1] : vector<8x8xf32> to vector<8xf32>
    %162 = vector.shape_cast %161 : vector<8xf32> to vector<8x1xf32>
    %163 = tpu.reciprocal %162 {approx = true} : vector<8x1xf32> -> vector<8x1xf32>
    %164 = vector.broadcast %163 : vector<8x1xf32> to vector<8x8xf32>
    %165 = arith.mulf %160, %164 : vector<8x8xf32>
    %c3_77 = arith.constant 3 : index
    %c1_78 = arith.constant 1 : index
    %c0_79 = arith.constant 0 : index
    %c0_80 = arith.constant 0 : index
    %166 = vector.load %arg12[%c3_77, %c1_78, %c0_79, %c0_80] : memref<4x2x8x8xf32, #tpu.memory_space<vmem>>, vector<1x1x8x8xf32>
    %167 = vector.shape_cast %166 : vector<1x1x8x8xf32> to vector<8x8xf32>
    %168 = vector.shape_cast %165 : vector<8x8xf32> to vector<1x1x8x8xf32>
    tpu.vector_store %arg12[%c3_77, %c1_78, %c0_79, %c0_80], %168 {strides = array<i32>} : memref<4x2x8x8xf32, #tpu.memory_space<vmem>>, vector<1x1x8x8xf32>,
    %cst_81 = arith.constant dense<0.000000e+00> : vector<8x8xf32>
    %169 = tpu.matmul %165, %152, %cst_81 {dimension_numbers = #tpu.dot_dimension_numbers<[1], [0], [0], [1], [0, 0, 1, 1], [], []>} : vector<8x8xf32>, vector<8x8xf32>, vector<8x8xf32> -> vector<8x8xf32>
    %170 = tpu.concatenate %109, %129, %149, %169 in 1 : vector<8x8xf32>, vector<8x8xf32>, vector<8x8xf32>, vector<8x8xf32> -> vector<8x32xf32>
    %171 = tpu.concatenate %89, %170 in 0 : vector<8x32xf32>, vector<8x32xf32> -> vector<16x32xf32>
    %c0_82 = arith.constant 0 : index
    %c0_83 = arith.constant 0 : index
    %172 = vector.load %arg7[%c0_82, %c0_83] : memref<32x32xf32, #tpu.memory_space<vmem>>, vector<32x32xf32>
    %cst_84 = arith.constant dense<0.000000e+00> : vector<16x32xf32>
    %173 = tpu.matmul %171, %172, %cst_84 {dimension_numbers = #tpu.dot_dimension_numbers<[1], [1], [0], [0], [0, 0, 1, 0], [], []>} : vector<16x32xf32>, vector<32x32xf32>, vector<16x32xf32> -> vector<16x32xf32>
    %c0_85 = arith.constant 0 : index
    %c0_86 = arith.constant 0 : index
    %174 = vector.load %arg8[%c0_85, %c0_86] : memref<1x32xf32, #tpu.memory_space<vmem>>, vector<1x32xf32>
    %175 = vector.broadcast %174 : vector<1x32xf32> to vector<16x32xf32>
    %176 = arith.addf %173, %175 : vector<16x32xf32>
    %177 = arith.addf %176, %0 : vector<16x32xf32>
    %cst_87 = arith.constant dense<0.000000e+00> : vector<16xf32>
    %178 = vector.multi_reduction <add>, %177, %cst_87 [1] : vector<16x32xf32> to vector<16xf32>
    %179 = vector.shape_cast %178 : vector<16xf32> to vector<16x1xf32>
    %cst_88 = arith.constant 3.200000e+01 : f32
    %180 = vector.broadcast %cst_88 : f32 to vector<16x1xf32>
    %181 = arith.divf %179, %180 : vector<16x1xf32>
    %182 = vector.broadcast %181 : vector<16x1xf32> to vector<16x32xf32>
    %183 = arith.subf %177, %182 : vector<16x32xf32>
    %184 = arith.mulf %183, %183 : vector<16x32xf32>
    %cst_89 = arith.constant dense<0.000000e+00> : vector<16xf32>
    %185 = vector.multi_reduction <add>, %184, %cst_89 [1] : vector<16x32xf32> to vector<16xf32>
    %186 = vector.shape_cast %185 : vector<16xf32> to vector<16x1xf32>
    %cst_90 = arith.constant 0.0322580636 : f32
    %187 = vector.broadcast %cst_90 : f32 to vector<16x1xf32>
    %188 = arith.mulf %186, %187 : vector<16x1xf32>
    %189 = math.sqrt %188 : vector<16x1xf32>
    %190 = vector.broadcast %181 : vector<16x1xf32> to vector<16x32xf32>
    %191 = arith.subf %177, %190 : vector<16x32xf32>
    %cst_91 = arith.constant 1.000000e-03 : f32
    %192 = vector.broadcast %cst_91 : f32 to vector<16x1xf32>
    %193 = arith.addf %189, %192 : vector<16x1xf32>
    %194 = tpu.reciprocal %193 {approx = true} : vector<16x1xf32> -> vector<16x1xf32>
    %195 = vector.broadcast %194 : vector<16x1xf32> to vector<16x32xf32>
    %196 = arith.mulf %191, %195 : vector<16x32xf32>
    %c0_92 = arith.constant 0 : index
    %c0_93 = arith.constant 0 : index
    %197 = vector.load %arg9[%c0_92, %c0_93] : memref<1x32xf32, #tpu.memory_space<vmem>>, vector<1x32xf32>
    %198 = vector.broadcast %197 : vector<1x32xf32> to vector<16x32xf32>
    %199 = arith.mulf %196, %198 : vector<16x32xf32>
    %c0_94 = arith.constant 0 : index
    %c0_95 = arith.constant 0 : index
    %200 = vector.load %arg10[%c0_94, %c0_95] : memref<1x32xf32, #tpu.memory_space<vmem>>, vector<1x32xf32>
    %201 = vector.broadcast %200 : vector<1x32xf32> to vector<16x32xf32>
    %202 = arith.addf %199, %201 : vector<16x32xf32>
    %c0_96 = arith.constant 0 : index
    %c0_97 = arith.constant 0 : index
    %203 = vector.load %arg11[%c0_96, %c0_97] : memref<16x32xf32, #tpu.memory_space<vmem>>, vector<16x32xf32>
    tpu.vector_store %arg11[%c0_96, %c0_97], %202 {strides = array<i32>} : memref<16x32xf32, #tpu.memory_space<vmem>>, vector<16x32xf32>,
    return
  }
  func.func @transform_0(%arg0: i32) -> (i32, i32) {
    %c0_i32 = arith.constant 0 : i32
    %c0_i32_0 = arith.constant 0 : i32
    return %arg0, %c0_i32 : i32, i32
  }
  func.func @transform_1(%arg0: i32) -> (i32, i32) {
    %c0_i32 = arith.constant 0 : i32
    %c0_i32_0 = arith.constant 0 : i32
    return %arg0, %c0_i32 : i32, i32
  }
  func.func @transform_2(%arg0: i32) -> (i32, i32) {
    %c0_i32 = arith.constant 0 : i32
    %c0_i32_0 = arith.constant 0 : i32
    return %arg0, %c0_i32 : i32, i32
  }
  func.func @transform_3(%arg0: i32) -> (i32, i32) {
    %c0_i32 = arith.constant 0 : i32
    %c0_i32_0 = arith.constant 0 : i32
    %c0_i32_1 = arith.constant 0 : i32
    return %c0_i32, %c0_i32_0 : i32, i32
  }
  func.func @transform_4(%arg0: i32) -> (i32, i32) {
    %c0_i32 = arith.constant 0 : i32
    %c0_i32_0 = arith.constant 0 : i32
    %c0_i32_1 = arith.constant 0 : i32
    return %c0_i32, %c0_i32_0 : i32, i32
  }
  func.func @transform_5(%arg0: i32) -> (i32, i32) {
    %c0_i32 = arith.constant 0 : i32
    %c0_i32_0 = arith.constant 0 : i32
    %c0_i32_1 = arith.constant 0 : i32
    return %c0_i32, %c0_i32_0 : i32, i32
  }
  func.func @transform_6(%arg0: i32) -> (i32, i32) {
    %c0_i32 = arith.constant 0 : i32
    %c0_i32_0 = arith.constant 0 : i32
    %c0_i32_1 = arith.constant 0 : i32
    return %c0_i32, %c0_i32_0 : i32, i32
  }
  func.func @transform_7(%arg0: i32) -> (i32, i32) {
    %c0_i32 = arith.constant 0 : i32
    %c0_i32_0 = arith.constant 0 : i32
    %c0_i32_1 = arith.constant 0 : i32
    return %c0_i32, %c0_i32_0 : i32, i32
  }
  func.func @transform_8(%arg0: i32) -> (i32, i32) {
    %c0_i32 = arith.constant 0 : i32
    %c0_i32_0 = arith.constant 0 : i32
    %c0_i32_1 = arith.constant 0 : i32
    return %c0_i32, %c0_i32_0 : i32, i32
  }
  func.func @transform_9(%arg0: i32) -> (i32, i32) {
    %c0_i32 = arith.constant 0 : i32
    %c0_i32_0 = arith.constant 0 : i32
    %c0_i32_1 = arith.constant 0 : i32
    return %c0_i32, %c0_i32_0 : i32, i32
  }
  func.func @transform_10(%arg0: i32) -> (i32, i32) {
    %c0_i32 = arith.constant 0 : i32
    %c0_i32_0 = arith.constant 0 : i32
    return %arg0, %c0_i32 : i32, i32
  }
  func.func @transform_11(%arg0: i32) -> (i32, i32, i32, i32) {
    %c0_i32 = arith.constant 0 : i32
    %c0_i32_0 = arith.constant 0 : i32
    %c0_i32_1 = arith.constant 0 : i32
    %c0_i32_2 = arith.constant 0 : i32
    return %c0_i32, %arg0, %c0_i32_0, %c0_i32_1 : i32, i32, i32, i32
  }
}

</mosaic_0001>

<bundles_post_ra>
// kernel: tpu_custom_call.1
= control target key start
LH: loop header
LB: loop body
LE: loop exit
PB: predicated region body
PF: predicated region fallthrough
CT: control target
= control target key end

     0   :  { %17 = vsyncpa [#allocation3], 0  ;;  %s2907_s0 = inlined_call_operand.hbm [shape: f32[16,32], index: 0, kind: input, shape index: {}]   ;;  %s2908_s1 = inlined_call_operand.hbm [shape: f32[16,32], index: 1, kind: input, shape index: {}]   ;;  %s2909_s2 = inlined_call_operand.hbm [shape: f32[16,32], index: 2, kind: input, shape index: {}]   ;;  %s2910_s3 = inlined_call_operand.hbm [shape: f32[32,32], index: 3, kind: input, shape index: {}]   ;;  %s2911_s4 = inlined_call_operand.hbm [shape: f32[32,32], index: 4, kind: input, shape index: {}]   ;;  %s2912_s5 = inlined_call_operand.hbm [shape: f32[32,32], index: 5, kind: input, shape index: {}]   ;;  %s2913_s6 = inlined_call_operand.hbm [shape: f32[32,32], index: 6, kind: input, shape index: {}]   ;;  %s2914_s7 = inlined_call_operand.vmem [shape: f32[1,32], index: 7, kind: input, shape index: {}]   ;;  %s2915_s8 = inlined_call_operand.vmem [shape: f32[1,32], index: 8, kind: input, shape index: {}]   ;;  %s2916_s9 = inlined_call_operand.vmem [shape: f32[1,32], index: 9, kind: input, shape index: {}]   ;;  %s2917_s10 = inlined_call_operand.hbm [shape: f32[16,32], index: 10, kind: output, shape index: {0}]   ;;  %s2918_s11 = inlined_call_operand.hbm [shape: f32[4,2,8,8], index: 11, kind: output, shape index: {1}]  }
   0x1   :  { %18 = vsyncpa [#allocation6], 0 }
   0x2   :  { %19 = vsyncpa [#allocation9], 0 }
   0x3   :  { %20 = vsyncpa [#allocation12], 0 }
   0x4   :  { %21 = vsyncpa [#allocation4], 0 }
   0x5   :  { %22 = vsyncpa [#allocation16], 0  ;;  %s2490_s17 = smov [#allocation5]   ;;  %s2491_s19 = smov [#allocation8]  }
   0x6   :  { %s40_s18 = sshll.u32 %s2490_s17, 4  ;;  %s64_s20 = sshll.u32 %s2491_s19, 4  ;;  %s41_s18 = int_to_ptr.vmem [resolvable:$true] %s40_s18  ;;  %s2568_s20 = int_to_ptr.vmem [resolvable:$true] %s64_s20 }
   0x7   :  { %s2280_s23 = scalar_lea.hbm %s2908_s1, 256 }
   0x8   :  { %p2281_p0 = scmp.ne.s32.totalorder %s2908_s1, %s2280_s23  ;;  %p2284_p1 = scmp.lt.u32.totalorder %s2280_s23, %s2908_s1 }
   0xa   :  { %p2286_p2 = pnand %p2284_p1, %p2281_p0 }
   0xc   :  { %2289 = shalt.err (!%p2286_p2)
}
   0xd   :  { %s2290_s28 = scalar_lea.vmem %s41_s18, 256  ;;  %p2295_p4 = scmp.lt.s32.totalorder %s41_s18, %s41_s18 }
   0xe   :  { %p2291_p3 = scmp.ne.s32.totalorder %s41_s18, %s2290_s28  ;;  %p2296_p5 = scmp.lt.s32.totalorder %s2290_s28, %s2290_s28 }
  0x10   :  { %p2297_p6 = por %p2296_p5, %p2295_p4 }
  0x12   :  { %p2298_p7 = pnand %p2297_p6, %p2291_p3 }
  0x14   :  { %2301 = shalt.err (!%p2298_p7)
}
  0x15   :  { %s2492_s29 = smov 128   ;;  %s2493_s30 = smov 8  }
  0x16   :  { %46 = dma.hbm_to_vmem [thread:$0]  %s2908_s1, 256, %s41_s18, [#allocation6], %s2492_s29, %s2492_s29, %s2493_s30  }
  0x17   :  { %s2302_s16 = scalar_lea.hbm %s2910_s3, 512 }
  0x18   :  { %p2303_p8 = scmp.ne.s32.totalorder %s2910_s3, %s2302_s16  ;;  %p2306_p9 = scmp.lt.u32.totalorder %s2302_s16, %s2910_s3 }
  0x1a   :  { %p2308_p10 = pnand %p2306_p9, %p2303_p8 }
  0x1c   :  { %2311 = shalt.err (!%p2308_p10)
}
  0x1d   :  { %s2312_s23 = scalar_lea.vmem %s2568_s20, 512  ;;  %p2317_p12 = scmp.lt.s32.totalorder %s2568_s20, %s2568_s20 }
  0x1e   :  { %p2313_p11 = scmp.ne.s32.totalorder %s2568_s20, %s2312_s23  ;;  %p2318_p13 = scmp.lt.s32.totalorder %s2312_s23, %s2312_s23 }
  0x20   :  { %p2319_p0 = por %p2318_p13, %p2317_p12 }
  0x22   :  { %p2320_p1 = pnand %p2319_p0, %p2313_p11 }
  0x24   :  { %2323 = shalt.err (!%p2320_p1)
}
  0x25   :  { %70 = dma.hbm_to_vmem [thread:$0]  %s2910_s3, 512, %s2568_s20, [#allocation9], %s2492_s29, %s2492_s29, %s2493_s30  }
  0x26   :  { %s2494_s24 = smov [#allocation11]   ;;  %s2495_s26 = smov [#allocation2]  }
  0x27   :  { %s88_s25 = sshll.u32 %s2494_s24, 4  ;;  %s28_s27 = sshll.u32 %s2495_s26, 4  ;;  %s89_s25 = int_to_ptr.vmem [resolvable:$true] %s88_s25  ;;  %s2605_s27 = int_to_ptr.vmem [resolvable:$true] %s28_s27 }
  0x28   :  { %s2324_s13 = scalar_lea.hbm %s2912_s5, 512 }
  0x29   :  { %p2325_p2 = scmp.ne.s32.totalorder %s2912_s5, %s2324_s13  ;;  %p2328_p3 = scmp.lt.u32.totalorder %s2324_s13, %s2912_s5 }
  0x2b   :  { %p2330_p4 = pnand %p2328_p3, %p2325_p2 }
  0x2d   :  { %2333 = shalt.err (!%p2330_p4)
}
  0x2e   :  { %s2334_s3 = scalar_lea.vmem %s89_s25, 512  ;;  %p2339_p6 = scmp.lt.s32.totalorder %s89_s25, %s89_s25 }
  0x2f   :  { %p2335_p5 = scmp.ne.s32.totalorder %s89_s25, %s2334_s3  ;;  %p2340_p7 = scmp.lt.s32.totalorder %s2334_s3, %s2334_s3 }
  0x31   :  { %p2341_p8 = por %p2340_p7, %p2339_p6 }
  0x33   :  { %p2342_p9 = pnand %p2341_p8, %p2335_p5 }
  0x35   :  { %2345 = shalt.err (!%p2342_p9)
}
  0x36   :  { %94 = dma.hbm_to_vmem [thread:$0]  %s2912_s5, 512, %s89_s25, [#allocation12], %s2492_s29, %s2492_s29, %s2493_s30  }
  0x37   :  { %s2346_s23 = scalar_lea.hbm %s2907_s0, 256 }
  0x38   :  { %p2347_p10 = scmp.ne.s32.totalorder %s2907_s0, %s2346_s23  ;;  %p2350_p11 = scmp.lt.u32.totalorder %s2346_s23, %s2907_s0 }
  0x3a   :  { %p2352_p12 = pnand %p2350_p11, %p2347_p10 }
  0x3c   :  { %2355 = shalt.err (!%p2352_p12)
}
  0x3d   :  { %s2356_s28 = scalar_lea.vmem %s2605_s27, 256  ;;  %p2361_p0 = scmp.lt.s32.totalorder %s2605_s27, %s2605_s27 }
  0x3e   :  { %p2357_p13 = scmp.ne.s32.totalorder %s2605_s27, %s2356_s28  ;;  %p2362_p1 = scmp.lt.s32.totalorder %s2356_s28, %s2356_s28 }
  0x40   :  { %p2363_p2 = por %p2362_p1, %p2361_p0 }
  0x42   :  { %p2364_p3 = pnand %p2363_p2, %p2357_p13 }
  0x44   :  { %2367 = shalt.err (!%p2364_p3)
}
  0x45   :  { %34 = dma.hbm_to_vmem [thread:$0]  %s2907_s0, 256, %s2605_s27, [#allocation3], %s2492_s29, %s2492_s29, %s2493_s30  }
  0x46   :  { %s2496_s12 = smov [#allocation7]   ;;  %s2497_s14 = smov [#allocation10]  }
  0x47   :  { %s52_s13 = sshll.u32 %s2496_s12, 4  ;;  %s76_s15 = sshll.u32 %s2497_s14, 4  ;;  %s53_s13 = int_to_ptr.vmem [resolvable:$true] %s52_s13  ;;  %s2642_s15 = int_to_ptr.vmem [resolvable:$true] %s76_s15 }
  0x48   :  { %s2368_s3 = scalar_lea.hbm %s2909_s2, 256 }
  0x49   :  { %p2369_p4 = scmp.ne.s32.totalorder %s2909_s2, %s2368_s3  ;;  %p2372_p5 = scmp.lt.u32.totalorder %s2368_s3, %s2909_s2 }
  0x4b   :  { %p2374_p6 = pnand %p2372_p5, %p2369_p4 }
  0x4d   :  { %2377 = shalt.err (!%p2374_p6)
}
  0x4e   :  { %s2378_s0 = scalar_lea.vmem %s53_s13, 256  ;;  %p2383_p8 = scmp.lt.s32.totalorder %s53_s13, %s53_s13 }
  0x4f   :  { %p2379_p7 = scmp.ne.s32.totalorder %s53_s13, %s2378_s0  ;;  %p2384_p9 = scmp.lt.s32.totalorder %s2378_s0, %s2378_s0 }
  0x51   :  { %p2385_p10 = por %p2384_p9, %p2383_p8 }
  0x53   :  { %p2386_p11 = pnand %p2385_p10, %p2379_p7 }
  0x55   :  { %2389 = shalt.err (!%p2386_p11)
}
  0x56   :  { %58 = dma.hbm_to_vmem [thread:$0]  %s2909_s2, 256, %s53_s13, [#allocation6], %s2492_s29, %s2492_s29, %s2493_s30  }
  0x57   :  { %s2390_s24 = scalar_lea.hbm %s2911_s4, 512 }
  0x58   :  { %p2391_p12 = scmp.ne.s32.totalorder %s2911_s4, %s2390_s24  ;;  %p2394_p13 = scmp.lt.u32.totalorder %s2390_s24, %s2911_s4 }
  0x5a   :  { %p2396_p0 = pnand %p2394_p13, %p2391_p12 }
  0x5c   :  { %2399 = shalt.err (!%p2396_p0)
}
  0x5d   :  { %s2400_s12 = scalar_lea.vmem %s2642_s15, 512  ;;  %p2405_p2 = scmp.lt.s32.totalorder %s2642_s15, %s2642_s15 }
  0x5e   :  { %p2401_p1 = scmp.ne.s32.totalorder %s2642_s15, %s2400_s12  ;;  %p2406_p3 = scmp.lt.s32.totalorder %s2400_s12, %s2400_s12 }
  0x60   :  { %p2407_p4 = por %p2406_p3, %p2405_p2 }
  0x62   :  { %p2408_p5 = pnand %p2407_p4, %p2401_p1 }
  0x64   :  { %2411 = shalt.err (!%p2408_p5)
}
  0x65   :  { %82 = dma.hbm_to_vmem [thread:$0]  %s2911_s4, 512, %s2642_s15, [#allocation9], %s2492_s29, %s2492_s29, %s2493_s30  }
  0x66   :  { %s2498_s14 = smov [#allocation13]   ;;  %s2412_s20 = scalar_lea.hbm %s2913_s6, 512 }
  0x67   :  { %s100_s16 = sshll.u32 %s2498_s14, 4  ;;  %p2413_p6 = scmp.ne.s32.totalorder %s2913_s6, %s2412_s20  ;;  %s101_s16 = int_to_ptr.vmem [resolvable:$true] %s100_s16 }
  0x68   :  { %p2416_p7 = scmp.lt.u32.totalorder %s2412_s20, %s2913_s6 }
  0x6a   :  { %p2418_p8 = pnand %p2416_p7, %p2413_p6 }
  0x6c   :  { %2421 = shalt.err (!%p2418_p8)
}
  0x6d   :  { %s2422_s27 = scalar_lea.vmem %s101_s16, 512  ;;  %p2427_p10 = scmp.lt.s32.totalorder %s101_s16, %s101_s16 }
  0x6e   :  { %p2423_p9 = scmp.ne.s32.totalorder %s101_s16, %s2422_s27  ;;  %p2428_p11 = scmp.lt.s32.totalorder %s2422_s27, %s2422_s27 }
  0x70   :  { %p2429_p12 = por %p2428_p11, %p2427_p10 }
  0x72   :  { %p2430_p13 = pnand %p2429_p12, %p2423_p9 }
  0x74   :  { %2433 = shalt.err (!%p2430_p13)
}
  0x75   :  { %106 = dma.hbm_to_vmem [thread:$0]  %s2913_s6, 512, %s101_s16, [#allocation12], %s2492_s29, %s2492_s29, %s2493_s30  }
  0x76   :  { %2478 = dma.done.wait [#allocation3], 256  }
  0x77   :  { %2479 = vsyncadd [#allocation3], 4294967040 }
  0x78   :  { %2480 = dma.done.wait [#allocation6], 512  }
  0x79   :  { %2481 = vsyncadd [#allocation6], 4294966784 }
  0x7a   :  { %2482 = dma.done.wait [#allocation9], 1024  }
  0x7b   :  { %2483 = vsyncadd [#allocation9], 4294966272 }
  0x7c   :  { %2484 = dma.done.wait [#allocation12], 1024  }
  0x7d   :  { %2485 = vsyncadd [#allocation12], 4294966272  ;;  %vm144_vm0 = vcmask 261120   ;;  %v140_v0 = vld [vmem:[#allocation8] sm:$0xff]  ;;  %v141_v1 = vld [vmem:[#allocation8 + $0x8] sm:$0xff]  ;;  %v2499_v16 = vmov 0.0  }
  0x7e   :  { %v142_v2 = vld [vmem:[#allocation8 + $0x10] sm:$0xff]  ;;  %v2186_v3 = vpack.c.bf16 %v141_v1, %v140_v0  ;;  %v143_v4 = vld [vmem:[#allocation8 + $0x18] sm:$0xff]  ;;  %v226_v7 = vld [vmem:[#allocation10] sm:$0xff]  ;;  %vm2500_vm1 = vmmov 0   ;;  %vm396_vm2 = vcmask 64512   ;;  %s2501_s6 = smov 112  }
  0x7f   :  { %v2694_v5 = vld [vmem:[#allocation2] sm:$0xff]  ;;  %v2190_v6 = vpack.c.bf16 %v143_v4, %v142_v2  ;;  %v227_v8 = vld [vmem:[#allocation10 + $0x8] sm:$0xff]  ;;  %v229_v11 = vld [vmem:[#allocation10 + $0x18] sm:$0xff]  ;;  %s2502_s23 = smov 120   ;;  %s2503_s1 = smov 104   ;;  %vm1077_vm4 = vcmask 130048  }
  0x80   :  { %2070 = vmatprep.mubr.msk.f32.mxu1 %vm144_vm0, %v2694_v5  ;;  %2187 = vmatprep.subr.bf16.mxu1 %v2186_v3  ;;  %v2194_v9 = vpack.c.bf16 %v227_v8, %v226_v7  ;;  %v228_v10 = vld [vmem:[#allocation10 + $0x10] sm:$0xff]  ;;  %v2698_v12 = vld [vmem:[#allocation2 + $0x8] sm:$0xff]  ;;  %v136_v14 = vld [vmem:[#allocation5] sm:$0xff]  ;;  %s2504_s18 = smov 16   ;;  %s2505_s24 = smov 24   ;;  %vm1079_vm5 = vcmask 195584  }
  0x81   :  { %2189 = vmatpush3.bf16.msra.mxu1 %v2186_v3  ;;  %v2198_v13 = vpack.c.bf16 %v229_v11, %v228_v10  ;;  %v137_v15 = vld [vmem:[#allocation5 + $0x8] sm:$0xff]  ;;  %v311_v17 = vld [vmem:[#allocation11] sm:$0xff]  ;;  %v313_v19 = vld [vmem:[#allocation11 + $0x10] sm:$0xff] }
  0x82   :  { %2191 = vmatprep.subr.bf16.mxu1 %v2190_v6  ;;  %v312_v18 = vld [vmem:[#allocation11 + $0x8] sm:$0xff]  ;;  %v314_v21 = vld [vmem:[#allocation11 + $0x18] sm:$0xff]  ;;  %v138_v22 = vld [vmem:[#allocation7] sm:$0xff] }
  0x83   :  { %v2202_v20 = vpack.c.bf16 %v312_v18, %v311_v17  ;;  %v2206_v23 = vpack.c.bf16 %v314_v21, %v313_v19  ;;  %2092 = vmatprep.mubr.msk.f32.mxu0 %vm144_vm0, %v138_v22  ;;  %v139_v24 = vld [vmem:[#allocation7 + $0x8] sm:$0xff]  ;;  %vm2211_vm3 = vmpackc.low %vm144_vm0, %vm144_vm0 }
  0x85   :  { %2193 = vmatpush3.bf16.msra.mxu1 %v2190_v6  ;;  %2203 = vmatprep.subr.bf16.mxu0 %v2202_v20 }
  0x86   :  { %2195 = vmatprep.subr.bf16.mxu1 %v2194_v9  ;;  %2205 = vmatpush3.bf16.msra.mxu0 %v2202_v20 }
  0x87   :  { %2207 = vmatprep.subr.bf16.mxu0 %v2206_v23 }
  0x88   :  { %2071 = vmatmul.mubr.msk.f32.vlgmr.msra.gmra.mrb[0].mxu1 %vm144_vm0, %v2698_v12 }
  0x89   :  { %2197 = vmatpush3.bf16.msra.mxu1 %v2194_v9  ;;  %2081 = vmatprep.mubr.msk.f32.mxu1 %vm144_vm0, %v136_v14 }
  0x8a   :  { %2199 = vmatprep.subr.bf16.mxu1 %v2198_v13  ;;  %2209 = vmatpush3.bf16.msra.mxu0 %v2206_v23 }
  0x8b   :  { %2105 = vmatprep.subr.mxu0 %v2499_v16 }
  0x8d   :  { %2201 = vmatpush3.bf16.msra.mxu1 %v2198_v13  ;;  %2093 = vmatmul.mubr.msk.f32.vlgmr.msra.gmra.mrb[0].mxu0 %vm144_vm0, %v139_v24 }
  0x8e   :  { %2095 = vmatprep.subr.mxu1 %v2499_v16  ;;  %2107 = vmatprep.mubr.msk.f32.mxu0 %vm2500_vm1, %v2499_v16 }
  0x90   :  { %2082 = vmatmul.mubr.msk.f32.vlgmr.msra.gmra.mrb[2].mxu1 %vm144_vm0, %v137_v15 }
  0x91   :  { %2097 = vmatprep.mubr.msk.f32.mxu1 %vm2500_vm1, %v2499_v16 }
 0x15b   :  { %v2072_v25 = vpop.f32.mrb[0].mxu1 }
 0x15c   :  { %v217_v26 = vpop.f32.mrb[1].mxu1 }
 0x160   :  { %v2730_v31 = vpop.f32.mrb[0].mxu0 }
 0x161   :  { %v2733_v32 = vpop.f32.mrb[1].mxu0 }
 0x163   :  { %v2083_v27 = vpop.f32.mrb[2].mxu1 }
 0x164   :  { %v302_v28 = vpop.f32.mrb[3].mxu1 }
 0x165   :  { %730 = vrot.lane.b32.xlu1 %v302_v28, %s2501_s6  ;;  %561 = vrot.lane.b32.xlu0 %v302_v28, %s2502_s23 }
 0x166   :  { %2096 = vmatpush3.xpose.msk.msra.mxu1 %vm396_vm2, %v302_v28 }
 0x167   :  { %2100 = vmatprep.subr.mxu1 %v2499_v16 }
 0x169   :  { %2098 = vmatmul.mubr.msk.f32.vlgmr.msra.gmra.mrb[4].mxu1 %vm396_vm2, %v217_v26  ;;  %728 = vrot.lane.b32.xlu1 %v217_v26, %s2501_s6 }
 0x16a   :  { %559 = vrot.lane.b32.xlu0 %v217_v26, %s2502_s23  ;;  %2102 = vmatprep.mubr.msk.f32.mxu1 %vm2500_vm1, %v2499_v16 }
 0x16b   :  { %2101 = vmatpush3.msra.mxu1 %v2733_v32 }
 0x16c   :  { %2110 = vmatprep.subr.mxu1 %v2499_v16 }
 0x16d   :  { %896 = vrot.lane.b32.xlu1 %v217_v26, %s2503_s1 }
 0x16e   :  { %898 = vrot.lane.b32.xlu0 %v302_v28, %s2503_s1 }
 0x171   :  { %1244 = vrot.lane.b32.xlu1 %v2072_v25, %s2502_s23 }
 0x172   :  { %1246 = vrot.lane.b32.xlu0 %v2083_v27, %s2502_s23 }
 0x175   :  { %1413 = vrot.lane.b32.xlu1 %v2072_v25, %s2501_s6 }
 0x176   :  { %1415 = vrot.lane.b32.xlu0 %v2083_v27, %s2501_s6 }
 0x179   :  { %1581 = vrot.lane.b32.xlu1 %v2072_v25, %s2503_s1 }
 0x17a   :  { %1583 = vrot.lane.b32.xlu0 %v2083_v27, %s2503_s1 }
 0x1d7   :  { %v731_v29 = vpop.permute.xlu1 %730  ;;  %v562_v30 = vpop.permute.xlu0 %561 }
 0x1d8   :  { %2106 = vmatpush3.xpose.msk.msra.mxu0 %vm396_vm2, %v562_v30 }
 0x1d9   :  { %2115 = vmatprep.subr.mxu0 %v2499_v16 }
 0x1db   :  { %v729_v33 = vpop.permute.xlu1 %728 }
 0x1dc   :  { %v560_v34 = vpop.permute.xlu0 %559 }
 0x1dd   :  { %2108 = vmatmul.mubr.msk.f32.vlgmr.msra.gmra.mrb[2].mxu0 %vm396_vm2, %v560_v34 }
 0x1de   :  { %2116 = vmatpush3.xpose.msk.msra.mxu0 %vm396_vm2, %v731_v29  ;;  %2117 = vmatprep.mubr.msk.f32.mxu0 %vm2500_vm1, %v2499_v16 }
 0x1df   :  { %2125 = vmatprep.subr.mxu0 %v2499_v16  ;;  %v897_v36 = vpop.permute.xlu1 %896 }
 0x1e0   :  { %v899_v35 = vpop.permute.xlu0 %898 }
 0x1e1   :  { %2118 = vmatmul.mubr.msk.f32.vlgmr.msra.gmra.mrb[4].mxu0 %vm396_vm2, %v729_v33 }
 0x1e2   :  { %2126 = vmatpush3.xpose.msk.msra.mxu0 %vm396_vm2, %v899_v35  ;;  %2127 = vmatprep.mubr.msk.f32.mxu0 %vm2500_vm1, %v2499_v16 }
 0x1e3   :  { %2135 = vmatprep.subr.mxu0 %v2499_v16  ;;  %v1245_v38 = vpop.permute.xlu1 %1244 }
 0x1e4   :  { %v1247_v37 = vpop.permute.xlu0 %1246 }
 0x1e5   :  { %2128 = vmatmul.mubr.msk.f32.vlgmr.msra.gmra.mrb[6].mxu0 %vm396_vm2, %v897_v36 }
 0x1e6   :  { %2136 = vmatpush3.xpose.msk.msra.mxu0 %vm396_vm2, %v2083_v27  ;;  %2137 = vmatprep.mubr.msk.f32.mxu0 %vm2500_vm1, %v2499_v16 }
 0x1e7   :  { %2145 = vmatprep.subr.mxu0 %v2499_v16  ;;  %v1414_v40 = vpop.permute.xlu1 %1413 }
 0x1e8   :  { %v1416_v39 = vpop.permute.xlu0 %1415 }
 0x1e9   :  { %2138 = vmatmul.mubr.msk.f32.vlgmr.msra.gmra.mrb[8].mxu0 %vm396_vm2, %v2072_v25 }
 0x1ea   :  { %2146 = vmatpush3.xpose.msk.msra.mxu0 %vm396_vm2, %v1247_v37  ;;  %2147 = vmatprep.mubr.msk.f32.mxu0 %vm2500_vm1, %v2499_v16 }
 0x1eb   :  { %2155 = vmatprep.subr.mxu0 %v2499_v16  ;;  %v1582_v42 = vpop.permute.xlu1 %1581 }
 0x1ec   :  { %v1584_v41 = vpop.permute.xlu0 %1583 }
 0x1ed   :  { %2148 = vmatmul.mubr.msk.f32.vlgmr.msra.gmra.mrb[10].mxu0 %vm396_vm2, %v1245_v38 }
 0x1ee   :  { %2156 = vmatpush3.xpose.msk.msra.mxu0 %vm396_vm2, %v1416_v39  ;;  %2157 = vmatprep.mubr.msk.f32.mxu0 %vm2500_vm1, %v2499_v16 }
 0x1ef   :  { %2165 = vmatprep.subr.mxu0 %v2499_v16 }
 0x1f1   :  { %2158 = vmatmul.mubr.msk.f32.vlgmr.msra.gmra.mrb[12].mxu0 %vm396_vm2, %v1414_v40 }
 0x1f2   :  { %2166 = vmatpush3.xpose.msk.msra.mxu0 %vm396_vm2, %v1584_v41  ;;  %2167 = vmatprep.mubr.msk.f32.mxu0 %vm2500_vm1, %v2499_v16 }
 0x1f5   :  { %2168 = vmatmul.mubr.msk.f32.vlgmr.msra.gmra.mrb[14].mxu0 %vm396_vm2, %v1582_v42 }
 0x23c   :  { %v469_v43 = vpop.f32.mrb[4].mxu1 }
 0x23d   :  { %v473_v44 = vmul.f32 0.35355338, %v469_v43  ;;  %v2099_v45 = vpop.f32.mrb[5].mxu1 }
 0x23f   :  { %v474_v46 = vsel %vm396_vm2, %v473_v44, -inf }
 0x240   :  { %475 = vmax.xlane.f32.xlu0 %v474_v46 }
 0x2b0   :  { %v633_v47 = vpop.f32.mrb[2].mxu0 }
 0x2b1   :  { %v637_v48 = vmul.f32 0.35355338, %v633_v47  ;;  %v2109_v49 = vpop.f32.mrb[3].mxu0 }
 0x2b3   :  { %v638_v50 = vsel %vm396_vm2, %v637_v48, -inf }
 0x2b4   :  { %639 = vmax.xlane.f32.xlu1 %v638_v50  ;;  %v802_v51 = vpop.f32.mrb[4].mxu0 }
 0x2b5   :  { %v806_v52 = vmul.f32 0.35355338, %v802_v51  ;;  %v2119_v53 = vpop.f32.mrb[5].mxu0 }
 0x2b7   :  { %v807_v54 = vsel %vm396_vm2, %v806_v52, -inf }
 0x2b8   :  { %v970_v55 = vpop.f32.mrb[6].mxu0  ;;  %808 = vmax.xlane.f32.xlu0 %v807_v54 }
 0x2b9   :  { %v974_v56 = vmul.f32 0.35355338, %v970_v55  ;;  %v2129_v57 = vpop.f32.mrb[7].mxu0 }
 0x2bb   :  { %v975_v58 = vsel %vm396_vm2, %v974_v56, -inf }
 0x2bc   :  { %v1153_v59 = vpop.f32.mrb[8].mxu0  ;;  %976 = vmax.xlane.f32.xlu0 %v975_v58 }
 0x2bd   :  { %v1157_v60 = vmul.f32 0.35355338, %v1153_v59  ;;  %v2139_v61 = vpop.f32.mrb[9].mxu0 }
 0x2bf   :  { %v1158_v62 = vsel %vm396_vm2, %v1157_v60, -inf }
 0x2c0   :  { %1159 = vmax.xlane.f32.xlu1 %v1158_v62  ;;  %v1318_v63 = vpop.f32.mrb[10].mxu0 }
 0x2c1   :  { %v1322_v0 = vmul.f32 0.35355338, %v1318_v63  ;;  %v2149_v1 = vpop.f32.mrb[11].mxu0 }
 0x2c3   :  { %v1323_v2 = vsel %vm396_vm2, %v1322_v0, -inf }
 0x2c4   :  { %v1487_v3 = vpop.f32.mrb[12].mxu0  ;;  %1324 = vmax.xlane.f32.xlu0 %v1323_v2 }
 0x2c5   :  { %v1491_v4 = vmul.f32 0.35355338, %v1487_v3  ;;  %v2159_v6 = vpop.f32.mrb[13].mxu0 }
 0x2c7   :  { %v1492_v7 = vsel %vm396_vm2, %v1491_v4, -inf }
 0x2c8   :  { %1493 = vmax.xlane.f32.xlu1 %v1492_v7  ;;  %v1655_v8 = vpop.f32.mrb[14].mxu0 }
 0x2c9   :  { %v1659_v9 = vmul.f32 0.35355338, %v1655_v8  ;;  %v2169_v10 = vpop.f32.mrb[15].mxu0 }
 0x2cb   :  { %v1660_v11 = vsel %vm396_vm2, %v1659_v9, -inf }
 0x2cc   :  { %1661 = vmax.xlane.f32.xlu0 %v1660_v11 }
 0x2cd   :  { %v476_v13 = vpop.xlane.xlu0 %475 }
 0x2ce   :  { %v477_v14 = vsub.f32 %v473_v44, %v476_v13 }
 0x2d0   :  { %v478_v15 = vmul.f32 1.442695, %v477_v14 }
 0x2d2   :  { %2240 = vpow2.f32 %v478_v15 }
 0x2d9   :  { %652 = vrot.lane.b32.xlu1 %v2733_v32, %s2502_s23 }
 0x2dc   :  { %v2241_v17 = vpop.eup %2240 }
 0x2dd   :  { %v480_v18 = vsel %vm396_vm2, %v2241_v17, 0.0 }
 0x2fd   :  { %481 = vadd.xlane.f32.xlu1 %v480_v18 }
 0x30e   :  { %988 = vrot.lane.b32.xlu1 %v2733_v32, %s2503_s1 }
 0x341   :  { %v640_v19 = vpop.xlane.xlu1 %639 }
 0x342   :  { %v641_v20 = vsub.f32 %v637_v48, %v640_v19 }
 0x344   :  { %v642_v21 = vmul.f32 1.442695, %v641_v20 }
 0x345   :  { %v809_v22 = vpop.xlane.xlu0 %808 }
 0x346   :  { %2242 = vpow2.f32 %v642_v21  ;;  %v810_v23 = vsub.f32 %v806_v52, %v809_v22 }
 0x348   :  { %v811_v24 = vmul.f32 1.442695, %v810_v23 }
 0x349   :  { %v977_v29 = vpop.xlane.xlu0 %976 }
 0x34a   :  { %2244 = vpow2.f32 %v811_v24  ;;  %v978_v30 = vsub.f32 %v974_v56, %v977_v29  ;;  %v1764_v29 = vld [vmem:[#allocation13] sm:$0xff] }
 0x34c   :  { %v979_v36 = vmul.f32 1.442695, %v978_v30  ;;  %v1765_v30 = vld [vmem:[#allocation13 + $0x8] sm:$0xff] }
 0x34d   :  { %v1160_v33 = vpop.xlane.xlu1 %1159 }
 0x34e   :  { %v1161_v35 = vsub.f32 %v1157_v60, %v1160_v33  ;;  %2246 = vpow2.f32 %v979_v36  ;;  %v2210_v33 = vpack.c.bf16 %v1765_v30, %v1764_v29 }
 0x350   :  { %v2243_v25 = vpop.eup %2242  ;;  %v1162_v40 = vmul.f32 1.442695, %v1161_v35  ;;  %2212 = vmatprep.subr.msk.bf16.mxu0 %vm2211_vm3, %v2210_v33 }
 0x351   :  { %v644_v26 = vsel %vm396_vm2, %v2243_v25, 0.0  ;;  %v1325_v34 = vpop.xlane.xlu0 %1324  ;;  %2215 = vmatpush3.bf16.xpose.msk.msra.mxu0 %vm2211_vm3, %v2210_v33 }
 0x352   :  { %645 = vadd.xlane.f32.xlu0 %v644_v26  ;;  %v1326_v37 = vsub.f32 %v1322_v0, %v1325_v34  ;;  %2248 = vpow2.f32 %v1162_v40  ;;  %v1767_v34 = vld [vmem:[#allocation13 + $0x18] sm:$0xff] }
 0x354   :  { %v2781_v27 = vpop.eup %2244  ;;  %v1327_v42 = vmul.f32 1.442695, %v1326_v37 }
 0x355   :  { %v813_v28 = vsel %vm396_vm2, %v2781_v27, 0.0  ;;  %v1494_v38 = vpop.xlane.xlu1 %1493 }
 0x356   :  { %814 = vadd.xlane.f32.xlu1 %v813_v28  ;;  %v1495_v41 = vsub.f32 %v1491_v4, %v1494_v38  ;;  %2250 = vpow2.f32 %v1327_v42 }
 0x358   :  { %v1496_v44 = vmul.f32 1.442695, %v1495_v41 }
 0x359   :  { %v1662_v39 = vpop.xlane.xlu0 %1661  ;;  %v653_v47 = vpop.permute.xlu1 %652 }
 0x35a   :  { %v1663_v43 = vsub.f32 %v1659_v9, %v1662_v39  ;;  %2252 = vpow2.f32 %v1496_v44 }
 0x35c   :  { %v1664_v45 = vmul.f32 1.442695, %v1663_v43 }
 0x35e   :  { %2254 = vpow2.f32 %v1664_v45 }
 0x367   :  { %1337 = vrot.lane.b32.xlu1 %v2730_v31, %s2502_s23 }
 0x368   :  { %820 = vrot.lane.b32.xlu0 %v2733_v32, %s2501_s6  ;;  %v2247_v32 = vpop.eup %2246 }
 0x369   :  { %v2789_v46 = vpop.eup %2248  ;;  %v981_v48 = vsel %vm396_vm2, %v2247_v32, 0.0 }
 0x36a   :  { %v2792_v49 = vpop.eup %2250  ;;  %v1164_v52 = vsel %vm396_vm2, %v2789_v46, 0.0 }
 0x36b   :  { %v2794_v50 = vpop.eup %2252  ;;  %v1329_v53 = vsel %vm396_vm2, %v2792_v49, 0.0 }
 0x36c   :  { %v2800_v54 = vpop.eup %2254  ;;  %v1498_v55 = vsel %vm396_vm2, %v2794_v50, 0.0 }
 0x36d   :  { %v1666_v56 = vsel %vm396_vm2, %v2800_v54, 0.0 }
 0x387   :  { %982 = vadd.xlane.f32.xlu0 %v981_v48 }
 0x38a   :  { %v482_v51 = vpop.xlane.xlu1 %481 }
 0x38b   :  { %2256 = vrcp.f32 %v482_v51  ;;  %1165 = vadd.xlane.f32.xlu1 %v1164_v52  ;;  %1330 = vadd.xlane.f32.xlu0 %v1329_v53 }
 0x38e   :  { %v989_v59 = vpop.permute.xlu1 %988 }
 0x38f   :  { %1499 = vadd.xlane.f32.xlu1 %v1498_v55  ;;  %1667 = vadd.xlane.f32.xlu0 %v1666_v56 }
 0x395   :  { %v2257_v57 = vpop.eup %2256 }
 0x396   :  { %v484_v58 = vmul.f32 %v2257_v57, %v2241_v17  ;;  %v1997_v57 = vld [vmem:[%s2914_s7] ss:$0 sm:$0xff]  ;;  %s2506_s7 = smov [#allocation15]  }
 0x397   :  { %s1948_s5 = sshll.u32 %s2506_s7, 4  ;;  %s1949_s5 = int_to_ptr.vmem [resolvable:$true] %s1948_s5 }
 0x398   :  { %485 = vst.msk [vmem:[#allocation15] sm:$0xff] %vm396_vm2, %v484_v58  ;;  %2103 = vmatmul.mubr.msk.f32.vlgmr.msra.gmra.mrb[6].mxu1 %vm396_vm2, %v484_v58  ;;  %s2434_s25 = scalar_lea.vmem %s1949_s5, 1024  ;;  %p2439_p1 = scmp.lt.s32.totalorder %s1949_s5, %s1949_s5 }
 0x399   :  { %2111 = vmatpush3.msra.mxu1 %v653_v47  ;;  %2112 = vmatprep.mubr.msk.f32.mxu1 %vm2500_vm1, %v2499_v16  ;;  %p2435_p0 = scmp.ne.s32.totalorder %s1949_s5, %s2434_s25  ;;  %p2440_p2 = scmp.lt.s32.totalorder %s2434_s25, %s2434_s25 }
 0x39a   :  { %2120 = vmatprep.subr.mxu1 %v2499_v16 }
 0x39b   :  { %p2441_p3 = por %p2440_p2, %p2439_p1 }
 0x39d   :  { %p2442_p4 = pnand %p2441_p3, %p2435_p0 }
 0x3a0   :  { %1673 = vrot.lane.b32.xlu1 %v2730_v31, %s2503_s1 }
 0x3a5   :  { %1505 = vrot.lane.b32.xlu0 %v2730_v31, %s2501_s6 }
 0x3df   :  { %v646_v60 = vpop.xlane.xlu0 %645 }
 0x3e0   :  { %2258 = vrcp.f32 %v646_v60 }
 0x3e3   :  { %v815_v61 = vpop.xlane.xlu1 %814  ;;  %v821_v0 = vpop.permute.xlu0 %820 }
 0x3e4   :  { %2260 = vrcp.f32 %v815_v61 }
 0x3e7   :  { %v1338_v3 = vpop.permute.xlu1 %1337 }
 0x3ea   :  { %v2259_v62 = vpop.eup %2258 }
 0x3eb   :  { %v648_v63 = vmul.f32 %v2259_v62, %v2243_v25 }
 0x3ed   :  { %650 = vst.msk [vmem:[#allocation15 + $0x10] sm:$0xff] %vm396_vm2, %v648_v63  ;;  %2113 = vmatmul.mubr.msk.f32.vlgmr.msra.gmra.mrb[8].mxu1 %vm396_vm2, %v648_v63 }
 0x3ee   :  { %v2261_v1 = vpop.eup %2260  ;;  %2121 = vmatpush3.msra.mxu1 %v821_v0  ;;  %2122 = vmatprep.mubr.msk.f32.mxu1 %vm2500_vm1, %v2499_v16 }
 0x3ef   :  { %v817_v2 = vmul.f32 %v2261_v1, %v2781_v27  ;;  %2130 = vmatprep.subr.mxu1 %v2499_v16 }
 0x3f1   :  { %819 = vst.msk [vmem:[#allocation15 + $0x20] sm:$0xff] %vm396_vm2, %v817_v2  ;;  %2123 = vmatmul.mubr.msk.f32.vlgmr.msra.gmra.mrb[10].mxu1 %vm396_vm2, %v817_v2 }
 0x3f2   :  { %2131 = vmatpush3.msra.mxu1 %v989_v59  ;;  %2132 = vmatprep.mubr.msk.f32.mxu1 %vm2500_vm1, %v2499_v16 }
 0x3f3   :  { %2140 = vmatprep.subr.mxu1 %v2499_v16 }
 0x414   :  { %v983_v4 = vpop.xlane.xlu0 %982 }
 0x415   :  { %2262 = vrcp.f32 %v983_v4 }
 0x418   :  { %v1166_v6 = vpop.xlane.xlu1 %1165  ;;  %v1331_v7 = vpop.xlane.xlu0 %1330 }
 0x419   :  { %2264 = vrcp.f32 %v1166_v6 }
 0x41a   :  { %2266 = vrcp.f32 %v1331_v7 }
 0x41c   :  { %v1500_v8 = vpop.xlane.xlu1 %1499  ;;  %v1668_v9 = vpop.xlane.xlu0 %1667 }
 0x41d   :  { %2268 = vrcp.f32 %v1500_v8 }
 0x41e   :  { %2270 = vrcp.f32 %v1668_v9 }
 0x41f   :  { %v2263_v10 = vpop.eup %2262 }
 0x420   :  { %v985_v11 = vmul.f32 %v2263_v10, %v2247_v32  ;;  %v1506_v21 = vpop.permute.xlu0 %1505  ;;  %v1674_v22 = vpop.permute.xlu1 %1673 }
 0x422   :  { %987 = vst.msk [vmem:[#allocation15 + $0x30] sm:$0xff] %vm396_vm2, %v985_v11  ;;  %2133 = vmatmul.mubr.msk.f32.vlgmr.msra.gmra.mrb[12].mxu1 %vm396_vm2, %v985_v11 }
 0x423   :  { %v2265_v13 = vpop.eup %2264  ;;  %2141 = vmatpush3.msra.mxu1 %v2730_v31  ;;  %2142 = vmatprep.mubr.msk.f32.mxu1 %vm2500_vm1, %v2499_v16 }
 0x424   :  { %v2267_v14 = vpop.eup %2266  ;;  %v1168_v15 = vmul.f32 %v2265_v13, %v2789_v46  ;;  %2150 = vmatprep.subr.mxu1 %v2499_v16 }
 0x425   :  { %v1333_v17 = vmul.f32 %v2267_v14, %v2792_v49 }
 0x426   :  { %1170 = vst.msk [vmem:[#allocation15 + $0x8] sm:$0xff] %vm396_vm2, %v1168_v15  ;;  %2143 = vmatmul.mubr.msk.f32.vlgmr.msra.gmra.mrb[14].mxu1 %vm396_vm2, %v1168_v15 }
 0x427   :  { %v2269_v18 = vpop.eup %2268  ;;  %1335 = vst.msk [vmem:[#allocation15 + $0x18] sm:$0xff] %vm396_vm2, %v1333_v17  ;;  %2151 = vmatpush3.msra.mxu1 %v1338_v3  ;;  %2152 = vmatprep.mubr.msk.f32.mxu1 %vm2500_vm1, %v2499_v16 }
 0x428   :  { %v2271_v31 = vpop.eup %2270  ;;  %v1502_v19 = vmul.f32 %v2269_v18, %v2794_v50  ;;  %2160 = vmatprep.subr.mxu1 %v2499_v16 }
 0x429   :  { %v1670_v20 = vmul.f32 %v2271_v31, %v2800_v54 }
 0x42a   :  { %1504 = vst.msk [vmem:[#allocation15 + $0x28] sm:$0xff] %vm396_vm2, %v1502_v19  ;;  %2153 = vmatmul.mubr.msk.f32.vlgmr.msra.gmra.mrb[16].mxu1 %vm396_vm2, %v1333_v17 }
 0x42b   :  { %1672 = vst.msk [vmem:[#allocation15 + $0x38] sm:$0xff] %vm396_vm2, %v1670_v20  ;;  %2161 = vmatpush3.msra.mxu1 %v1506_v21  ;;  %2162 = vmatprep.mubr.msk.f32.mxu1 %vm2500_vm1, %v2499_v16 }
 0x42c   :  { %2170 = vmatprep.subr.mxu1 %v2499_v16 }
 0x42e   :  { %2163 = vmatmul.mubr.msk.f32.vlgmr.msra.gmra.mrb[18].mxu1 %vm396_vm2, %v1502_v19 }
 0x42f   :  { %2171 = vmatpush3.msra.mxu1 %v1674_v22  ;;  %2172 = vmatprep.mubr.msk.f32.mxu1 %vm2500_vm1, %v2499_v16  ;;  %v1766_v16 = vld [vmem:[#allocation13 + $0x10] sm:$0xff] }
 0x430   :  { %v2216_v35 = vpack.c.bf16 %v1767_v34, %v1766_v16 }
 0x432   :  { %2173 = vmatmul.mubr.msk.f32.vlgmr.msra.gmra.mrb[20].mxu1 %vm396_vm2, %v1670_v20  ;;  %2218 = vmatprep.subr.msk.bf16.mxu0 %vm2211_vm3, %v2216_v35 }
 0x433   :  { %2221 = vmatpush3.bf16.xpose.msk.msra.mxu0 %vm2211_vm3, %v2216_v35 }
 0x46b   :  { %v555_v23 = vpop.f32.mrb[6].mxu1 }
 0x46c   :  { %v2104_v24 = vpop.f32.mrb[7].mxu1 }
 0x4c0   :  { %v724_v25 = vpop.f32.mrb[8].mxu1 }
 0x4c1   :  { %1065 = vrot.lane.b32.xlu0 %v724_v25, %s2493_s30  ;;  %v2114_v26 = vpop.f32.mrb[9].mxu1 }
 0x4c4   :  { %v892_v27 = vpop.f32.mrb[10].mxu1 }
 0x4c5   :  { %1069 = vrot.lane.b32.xlu1 %v892_v27, %s2504_s18  ;;  %v2124_v28 = vpop.f32.mrb[11].mxu1 }
 0x4f5   :  { %v1060_v36 = vpop.f32.mrb[12].mxu1 }
 0x4f6   :  { %1073 = vrot.lane.b32.xlu1 %v1060_v36, %s2505_s24  ;;  %v2134_v37 = vpop.f32.mrb[13].mxu1 }
 0x4f9   :  { %v1240_v38 = vpop.f32.mrb[14].mxu1 }
 0x4fa   :  { %v2144_v39 = vpop.f32.mrb[15].mxu1 }
 0x4fd   :  { %v1409_v40 = vpop.f32.mrb[16].mxu1 }
 0x4fe   :  { %1750 = vrot.lane.b32.xlu0 %v1409_v40, %s2493_s30  ;;  %v2154_v41 = vpop.f32.mrb[17].mxu1 }
 0x501   :  { %v1577_v42 = vpop.f32.mrb[18].mxu1 }
 0x502   :  { %1754 = vrot.lane.b32.xlu0 %v1577_v42, %s2504_s18  ;;  %v2164_v43 = vpop.f32.mrb[19].mxu1 }
 0x505   :  { %v1745_v44 = vpop.f32.mrb[20].mxu1 }
 0x506   :  { %1758 = vrot.lane.b32.xlu1 %v1745_v44, %s2505_s24  ;;  %v2174_v45 = vpop.f32.mrb[21].mxu1 }
 0x533   :  { %v1066_v32 = vpop.permute.xlu0 %1065 }
 0x534   :  { %v1076_v47 = vsel %vm396_vm2, %v555_v23, %v1066_v32 }
 0x537   :  { %v1070_v46 = vpop.permute.xlu1 %1069 }
 0x538   :  { %v1078_v48 = vsel %vm1077_vm4, %v1076_v47, %v1070_v46 }
 0x568   :  { %v1074_v49 = vpop.permute.xlu1 %1073 }
 0x569   :  { %v1080_v50 = vsel %vm1079_vm5, %v1078_v48, %v1074_v49 }
 0x56a   :  { %2183 = vmatprep.mubr.msk.f32.mxu0 %vm144_vm0, %v1080_v50 }
 0x570   :  { %v1751_v51 = vpop.permute.xlu0 %1750 }
 0x571   :  { %v1761_v53 = vsel %vm396_vm2, %v1240_v38, %v1751_v51 }
 0x574   :  { %v1755_v52 = vpop.permute.xlu0 %1754 }
 0x575   :  { %v1762_v54 = vsel %vm1077_vm4, %v1761_v53, %v1755_v52 }
 0x578   :  { %v1759_v55 = vpop.permute.xlu1 %1758 }
 0x579   :  { %v1763_v56 = vsel %vm1079_vm5, %v1762_v54, %v1759_v55 }
 0x57a   :  { %2184 = vmatmul.mubr.msk.f32.vlgmr.msra.gmra.mrb[16].mxu0 %vm144_vm0, %v1763_v56 }
 0x64d   :  { %v2185_v58 = vpop.f32.mrb[16].mxu0 }
 0x64e   :  { %v1865_v59 = vadd.f32 %v2185_v58, %v1997_v57  ;;  %v1859_v60 = vpop.f32.mrb[17].mxu0 }
 0x64f   :  { %v1860_v61 = vadd.f32 %v1997_v57, %v1859_v60 }
 0x650   :  { %v1869_v62 = vadd.f32 %v1865_v59, %v2698_v12 }
 0x651   :  { %v1868_v63 = vadd.f32 %v1860_v61, %v2694_v5 }
 0x652   :  { %v1873_v0 = vsel %vm144_vm0, %v1869_v62, 0.0 }
 0x653   :  { %1874 = vadd.xlane.f32.xlu1 %v1873_v0  ;;  %v1870_v1 = vsel %vm144_vm0, %v1868_v63, 0.0 }
 0x654   :  { %1871 = vadd.xlane.f32.xlu0 %v1870_v1 }
 0x6e0   :  { %v1875_v2 = vpop.xlane.xlu1 %1874 }
 0x6e1   :  { %v1878_v3 = vmul.f32 0.03125, %v1875_v2  ;;  %v1872_v4 = vpop.xlane.xlu0 %1871 }
 0x6e2   :  { %v1877_v6 = vmul.f32 0.03125, %v1872_v4 }
 0x6e3   :  { %v1880_v7 = vsub.f32 %v1869_v62, %v1878_v3 }
 0x6e4   :  { %v1879_v8 = vsub.f32 %v1868_v63, %v1877_v6 }
 0x6e5   :  { %v1882_v11 = vmul.f32 %v1880_v7, %v1880_v7 }
 0x6e6   :  { %v1881_v9 = vmul.f32 %v1879_v8, %v1879_v8 }
 0x6e7   :  { %v1886_v12 = vsel %vm144_vm0, %v1882_v11, 0.0 }
 0x6e8   :  { %v1883_v10 = vsel %vm144_vm0, %v1881_v9, 0.0 }
 0x6e9   :  { %1884 = vadd.xlane.f32.xlu0 %v1883_v10 }
 0x6ed   :  { %1887 = vadd.xlane.f32.xlu0 %v1886_v12 }
 0x6ee   :  { %2445 = shalt.err (!%p2442_p4)
}
 0x6ef   :  { %s2446_s13 = scalar_lea.hbm %s2918_s11, 1024 }
 0x6f0   :  { %p2447_p5 = scmp.ne.s32.totalorder %s2918_s11, %s2446_s13  ;;  %p2450_p6 = scmp.lt.u32.totalorder %s2446_s13, %s2918_s11 }
 0x6f2   :  { %p2452_p7 = pnand %p2450_p6, %p2447_p5 }
 0x6f4   :  { %2455 = shalt.err (!%p2452_p7)
}
 0x6f5   :  { %1954 = dma.vmem_to_hbm [thread:$0]  %s1949_s5, 1024, %s2918_s11, [#allocation16], %s2492_s29, %s2492_s29, %s2493_s30  }
 0x6f6   :  { %v2004_v29 = vld [vmem:[%s2915_s8] ss:$0 sm:$0xff]  ;;  %s2507_s27 = smov [#allocation14]  }
 0x6f7   :  { %v2005_v33 = vld [vmem:[%s2916_s9] ss:$0 sm:$0xff]  ;;  %s1936_s4 = sshll.u32 %s2507_s27, 4  ;;  %s1937_s4 = int_to_ptr.vmem [resolvable:$true] %s1936_s4 }
 0x6f8   :  { %s2456_s15 = scalar_lea.vmem %s1937_s4, 256  ;;  %p2461_p9 = scmp.lt.s32.totalorder %s1937_s4, %s1937_s4 }
 0x6f9   :  { %p2457_p8 = scmp.ne.s32.totalorder %s1937_s4, %s2456_s15  ;;  %p2462_p10 = scmp.lt.s32.totalorder %s2456_s15, %s2456_s15 }
 0x6fb   :  { %p2463_p11 = por %p2462_p10, %p2461_p9 }
 0x6fd   :  { %p2464_p12 = pnand %p2463_p11, %p2457_p8 }
 0x776   :  { %v1885_v5 = vpop.xlane.xlu0 %1884 }
 0x777   :  { %v1889_v13 = vmul.f32 0.032258064, %v1885_v5 }
 0x779   :  { %2272 = vrsqrt.f32 %v1889_v13  ;;  %vm1893_vm6 = vcmp.eq.f32.partialorder %v1889_v13, inf  ;;  %v1896_v31 = vand.u32 2147483648, %v1889_v13  ;;  %vm1895_vm7 = vcmp.eq.f32.partialorder %v1889_v13, 0.0 }
 0x77a   :  { %v1888_v14 = vpop.xlane.xlu0 %1887 }
 0x77b   :  { %v1890_v15 = vmul.f32 0.032258064, %v1888_v14 }
 0x77d   :  { %2274 = vrsqrt.f32 %v1890_v15  ;;  %vm1900_vm8 = vcmp.eq.f32.partialorder %v1890_v15, inf  ;;  %v1903_v24 = vand.u32 2147483648, %v1890_v15  ;;  %vm1902_vm9 = vcmp.eq.f32.partialorder %v1890_v15, 0.0 }
 0x783   :  { %v2273_v17 = vpop.eup %2272 }
 0x784   :  { %v1892_v18 = vmul.f32 %v2273_v17, %v1889_v13 }
 0x786   :  { %v1894_v19 = vsel %vm1893_vm6, %v1889_v13, %v1892_v18 }
 0x787   :  { %v2275_v20 = vpop.eup %2274  ;;  %v1897_v21 = vsel %vm1895_vm7, %v1896_v31, %v1894_v19 }
 0x788   :  { %v1905_v22 = vadd.f32 0.001, %v1897_v21  ;;  %v1899_v23 = vmul.f32 %v2275_v20, %v1890_v15 }
 0x78a   :  { %2276 = vrcp.f32 %v1905_v22  ;;  %v1901_v25 = vsel %vm1900_vm8, %v1890_v15, %v1899_v23 }
 0x78b   :  { %v1904_v26 = vsel %vm1902_vm9, %v1903_v24, %v1901_v25 }
 0x78c   :  { %v1906_v27 = vadd.f32 0.001, %v1904_v26 }
 0x78e   :  { %2278 = vrcp.f32 %v1906_v27 }
 0x794   :  { %v2277_v28 = vpop.eup %2276 }
 0x795   :  { %v1909_v30 = vmul.f32 %v2277_v28, %v1879_v8 }
 0x797   :  { %v1918_v16 = vmul.f32 %v2004_v29, %v1909_v30 }
 0x798   :  { %v2279_v34 = vpop.eup %2278 }
 0x799   :  { %v1910_v35 = vmul.f32 %v2279_v34, %v1880_v7  ;;  %v1927_v36 = vadd.f32 %v2005_v33, %v1918_v16 }
 0x79b   :  { %v1919_v37 = vmul.f32 %v2004_v29, %v1910_v35  ;;  %1929 = vst.msk [vmem:[#allocation14] sm:$0xff] %vm144_vm0, %v1927_v36 }
 0x79d   :  { %v1928_v38 = vadd.f32 %v2005_v33, %v1919_v37 }
 0x79f   :  { %1930 = vst.msk [vmem:[#allocation14 + $0x8] sm:$0xff] %vm144_vm0, %v1928_v38 }
 0x7a0   :  { %2467 = shalt.err (!%p2464_p12)
}
 0x7a1   :  { %s2468_s6 = scalar_lea.hbm %s2917_s10, 256 }
 0x7a2   :  { %p2469_p13 = scmp.ne.s32.totalorder %s2917_s10, %s2468_s6  ;;  %p2472_p0 = scmp.lt.u32.totalorder %s2468_s6, %s2917_s10 }
 0x7a4   :  { %p2474_p1 = pnand %p2472_p0, %p2469_p13 }
 0x7a6   :  { %2477 = shalt.err (!%p2474_p1)
}
 0x7a7   :  { %1942 = dma.vmem_to_hbm [thread:$0]  %s1937_s4, 256, %s2917_s10, [#allocation4], %s2492_s29, %s2492_s29, %s2493_s30  }
 0x7a8   :  { %2486 = dma.done.wait [#allocation4], 256  }
 0x7a9   :  { %2487 = vsyncadd [#allocation4], 4294967040 }
 0x7aa   :  { %2488 = dma.done.wait [#allocation16], 1024  }
 0x7ab   :  { %2489 = vsyncadd [#allocation16], 4294966272 }
 0x7ac   :  { %1961 = vsyncpa [#allocation3], 1 }
 0x7ad   :  { %1962 = vsyncpa [#allocation6], 1 }
 0x7ae   :  { %1963 = vsyncpa [#allocation9], 1 }
 0x7af   :  { %1964 = vsyncpa [#allocation12], 1 }
 0x7b0   :  { %1965 = vsyncpa [#allocation4], 1 }
 0x7b1   :  { %1966 = vsyncpa [#allocation16], 1 }

</bundles_post_ra>
